<compile_context>
chip_gen: v7x
topology: tpu7x:2x2x1
jax: 0.10.0
libtpu: 0.0.40
codegen_flags: <defaults>
</compile_context>

<pallas_src>
import math

import jax
import jax.numpy as jnp
from jax.experimental import pallas as pl
from jax.experimental.pallas import tpu as pltpu

_TWO_PI = 2.0 * math.pi


def _mix32(v):
    """lowbias32 integer hash (uint32 -> uint32), good avalanche."""
    v = v ^ (v >> 16)
    v = v * jnp.uint32(0x7FEB352D)
    v = v ^ (v >> 15)
    v = v * jnp.uint32(0x846CA68B)
    v = v ^ (v >> 16)
    return v


def _hash_to_polar(pidx, key):
    """Counter-based RNG: unique index -> (r, theta) for Box-Muller."""
    h = _mix32(pidx ^ key)                       # stream-1 bits (1st mix)
    b2 = _mix32(h ^ jnp.uint32(0x68BC21EB))      # stream-2 bits (2nd mix)
    # Exponent/mantissa trick: floats in [1, 2) straight from the top hash bits.
    # u1's mantissa LSB is forced to 1 so u1 stays strictly inside (0, 1) and
    # log / rsqrt below are always finite.
    f1 = pltpu.bitcast((h >> 9) | jnp.uint32(0x3F800001), jnp.float32)
    f2 = pltpu.bitcast((b2 >> 9) | jnp.uint32(0x3F800000), jnp.float32)
    u1 = 2.0 - f1                                # (0, 1)
    t = -2.0 * jnp.log(u1)                       # > 0
    r = t * jax.lax.rsqrt(t)                     # == sqrt(t), forced onto the EUP slot
    theta = _TWO_PI * f2                         # uniform phase (mod 2*pi)
    return r, theta


def _key_and_sigma(params_ref, shape):
    """Read (seed, sigma) scalars from SMEM; sigma arrives as raw f32 bits."""
    key = (params_ref[0].astype(jnp.uint32) * jnp.uint32(0x9E3779B1)
           + jnp.uint32(0x85EBCA6B))
    sig = pltpu.bitcast(jnp.broadcast_to(params_ref[1], shape), jnp.float32)
    return key, sig


def _gn_paired_kernel(params_ref, x_ref, o_ref):
    """Main path (width % 256 == 0): one Box-Muller pair feeds the left/right halves."""
    block_rows, width = x_ref.shape
    half = width // 2

    base = pl.program_id(0) * (block_rows * half)
    row = jax.lax.broadcasted_iota(jnp.int32, (block_rows, half), 0)
    col = jax.lax.broadcasted_iota(jnp.int32, (block_rows, half), 1)
    pidx = (base + row * half + col).astype(jnp.uint32)   # globally unique pair index

    key, sig = _key_and_sigma(params_ref, (block_rows, half))
    r, theta = _hash_to_polar(pidx, key)
    z1 = r * jnp.cos(theta)
    z2 = r * jnp.sin(theta)

    x1 = x_ref[:, pl.ds(0, half)].astype(jnp.float32)
    x2 = x_ref[:, pl.ds(half, half)].astype(jnp.float32)
    o_ref[:, pl.ds(0, half)] = (x1 * (1.0 + sig * z1)).astype(o_ref.dtype)
    o_ref[:, pl.ds(half, half)] = (x2 * (1.0 + sig * z2)).astype(o_ref.dtype)


def _gn_unpaired_kernel(params_ref, x_ref, o_ref):
    """Fallback for awkward element counts: one normal per element, any block width."""
    block_rows, width = x_ref.shape

    base = pl.program_id(0) * (block_rows * width)
    row = jax.lax.broadcasted_iota(jnp.int32, (block_rows, width), 0)
    col = jax.lax.broadcasted_iota(jnp.int32, (block_rows, width), 1)
    idx = (base + row * width + col).astype(jnp.uint32)

    key, sig = _key_and_sigma(params_ref, (block_rows, width))
    r, theta = _hash_to_polar(idx, key)
    z = r * jnp.cos(theta)

    x = x_ref[...].astype(jnp.float32)
    o_ref[...] = (x * (1.0 + sig * z)).astype(o_ref.dtype)


def _pick_block_rows(rows, width, itemsize):
    """Rows per block for the (rows, width) bulk view."""
    total_bytes = rows * width * itemsize
    if total_bytes <= (256 << 10) or rows < 16:
        return rows                                 # single block (full 2nd-to-last dim)
    bytes_per_row = width * itemsize
    cap = max(8, (1 << 20) // bytes_per_row)        # <= ~1 MiB blocks (safe VMEM envelope)
    cap = min(cap, max(8, rows // 8))               # aim for >= 8 grid steps (v7x dual-TC)
    cap = max(8, cap - cap % 8)
    for d in range(cap, 7, -8):                     # largest multiple-of-8 divisor <= cap
        if rows % d == 0:
            return d
    return cap                                      # cdiv grid; final partial block padded


def gaussian_noise(x, seed, sigma=0.1):
    """out = x + N(0,1) * sigma * x, elementwise. Exact identity when sigma == 0."""
    if isinstance(sigma, (int, float)) and sigma == 0:
        return x

    orig_shape = x.shape
    n = x.size
    itemsize = x.dtype.itemsize

    # Scalars live in SMEM: [seed, f32 bits of sigma] -> no recompile per sigma value.
    sigma_bits = jax.lax.bitcast_convert_type(jnp.asarray(sigma, jnp.float32), jnp.int32)
    params = jnp.stack([jnp.asarray(seed, jnp.int32), sigma_bits])

    xf = x.reshape(-1)

    width = 0
    for w in (2048, 1024, 512, 256):                # lane-dense; halves stay 128-aligned
        if n % w == 0:
            width = w
            break

    if width:
        rows = n // width
        block_rows = _pick_block_rows(rows, width, itemsize)
        x2 = xf.reshape(rows, width)
        kernel = _gn_paired_kernel
        block_shape = (block_rows, width)
        num_blocks = pl.cdiv(rows, block_rows)
        index_map = lambda i, _params: (i, 0)
    else:
        # Awkward element count: lane-major (1, n) view + unpaired kernel.  Pallas pads
        # the final partial block and discards out-of-bounds writes, so there is no
        # host-side pad / slice HBM round trip.
        x2 = xf.reshape(1, n)
        block_w = n if n * itemsize <= (128 << 10) else (1 << 15)
        kernel = _gn_unpaired_kernel
        block_shape = (1, block_w)
        num_blocks = pl.cdiv(n, block_w)
        index_map = lambda i, _params: (0, i)

    out2 = pl.pallas_call(
        kernel,
        out_shape=jax.ShapeDtypeStruct(x2.shape, x.dtype),
        grid_spec=pltpu.PrefetchScalarGridSpec(
            num_scalar_prefetch=1,
            grid=(num_blocks,),
            in_specs=[pl.BlockSpec(block_shape, index_map)],
            out_specs=pl.BlockSpec(block_shape, index_map),
        ),
        # Counter-based RNG -> every grid step is independent; "parallel" lets v7x
        # shard the grid across both TensorCores (neutral on v5e / v6e).
        compiler_params=pltpu.CompilerParams(dimension_semantics=("parallel",)),
    )(params, x2)

    return out2.reshape(orig_shape)


if __name__ == "__main__":
    sigma = 0.1
    k1, k2, k3, k4, k5 = jax.random.split(jax.random.PRNGKey(0), 5)

    def noise_ratio(o, a, s):
        """std / mean of (o - a) normalized by sigma * rms(a); no division by a."""
        d = (o - a).astype(jnp.float32)
        rms = jnp.sqrt(jnp.mean(jnp.square(a.astype(jnp.float32))))
        return float(jnp.std(d) / (s * rms)), float(jnp.mean(d) / (s * rms))

    # Main small NCHW feature map: single-block paired path.
    x = jax.random.normal(k1, (2, 4, 16, 16), dtype=jnp.float32)
    out = jax.block_until_ready(gaussian_noise(x, seed=0, sigma=sigma))
    assert out.shape == x.shape and out.dtype == x.dtype
    assert bool(jnp.all(jnp.isfinite(out)))
    r, m = noise_ratio(out, x, sigma)
    assert 0.6 < r < 1.6 and abs(m) < 0.35

    # Deterministic per seed; different seeds give different noise.
    out_same = jax.block_until_ready(gaussian_noise(x, seed=0, sigma=sigma))
    assert bool(jnp.all(out_same == out))
    out_b = jax.block_until_ready(gaussian_noise(x, seed=1, sigma=sigma))
    assert not bool(jnp.all(out_b == out))

    # sigma == 0 is the exact identity (matches the PyTorch early-return).
    assert bool(jnp.all(gaussian_noise(x, seed=0, sigma=0.0) == x))

    # Traced / array sigma under jit (no recompile per sigma value).
    out_j = jax.block_until_ready(
        jax.jit(lambda a, s: gaussian_noise(a, seed=7, sigma=s))(x, jnp.float32(0.05)))
    assert out_j.shape == x.shape and bool(jnp.all(jnp.isfinite(out_j)))

    # Narrower-width (512) single-block path.
    x_odd = jax.random.normal(k2, (2, 3, 16, 16), dtype=jnp.float32)
    o_odd = jax.block_until_ready(gaussian_noise(x_odd, seed=3, sigma=sigma))
    r, _ = noise_ratio(o_odd, x_odd, sigma)
    assert o_odd.shape == x_odd.shape and 0.6 < r < 1.6

    # Multi-block path (grid of 8 steps -> exercises program_id-dependent indexing).
    x_med = jax.random.normal(k3, (2, 16, 64, 64), dtype=jnp.float32)
    o_med = jax.block_until_ready(gaussian_noise(x_med, seed=11, sigma=sigma))
    r, _ = noise_ratio(o_med, x_med, sigma)
    assert bool(jnp.all(jnp.isfinite(o_med))) and 0.6 < r < 1.6

    # Grid that does not divide rows evenly (padded final block, dropped OOB writes).
    x_part = jax.random.normal(k4, (2, 33, 64, 64), dtype=jnp.float32)
    o_part = jax.block_until_ready(gaussian_noise(x_part, seed=13, sigma=sigma))
    r, _ = noise_ratio(o_part, x_part, sigma)
    assert bool(jnp.all(jnp.isfinite(o_part))) and 0.6 < r < 1.6

    # Awkward element count (not a multiple of 256): no-pad (1, n) fallback kernel.
    x_awk = jax.random.normal(k5, (3, 5, 29), dtype=jnp.float32)
    o_awk = jax.block_until_ready(gaussian_noise(x_awk, seed=17, sigma=sigma))
    r, _ = noise_ratio(o_awk, x_awk, sigma)
    assert o_awk.shape == x_awk.shape and bool(jnp.all(jnp.isfinite(o_awk))) and 0.5 < r < 1.8

    print("KERNEL_OK")
</pallas_src>

<mosaic_0001>
module attributes {stable_mosaic.version = 11 : i64} {
  func.func @_gn_paired_kernel(%arg0: i32, %arg1: memref<2xi32, #tpu.memory_space<smem>>, %arg2: memref<1x2048xf32, #tpu.memory_space<vmem>>, %arg3: memref<1x2048xf32, #tpu.memory_space<vmem>>) attributes {dimension_semantics = [#tpu.dimension_semantics<parallel>], iteration_bounds = array<i64: 1>, scalar_prefetch = 1 : i64, scratch_operands = 0 : i64, tpu.core_type = #tpu.core_type<tc>, window_params = [{transform_indices = @transform_0, window_bounds = array<i64: 1, 2048>}, {transform_indices = @transform_1, window_bounds = array<i64: 1, 2048>}]} {
    %c1024_i32 = arith.constant 1024 : i32
    %0 = arith.muli %arg0, %c1024_i32 : i32
    %1 = tpu.iota {dimensions = array<i32: 0>} : vector<1x1024xi32>
    %2 = tpu.iota {dimensions = array<i32: 1>} : vector<1x1024xi32>
    %c1024_i32_0 = arith.constant 1024 : i32
    %3 = vector.broadcast %c1024_i32_0 : i32 to vector<1x1024xi32>
    %4 = arith.muli %1, %3 : vector<1x1024xi32>
    %5 = vector.broadcast %0 : i32 to vector<1x1024xi32>
    %6 = arith.addi %5, %4 : vector<1x1024xi32>
    %7 = arith.addi %6, %2 : vector<1x1024xi32>
    %c0 = arith.constant 0 : index
    %8 = memref.load %arg1[%c0] : memref<2xi32, #tpu.memory_space<smem>>
    %c-1640531535_i32 = arith.constant -1640531535 : i32
    %9 = arith.muli %8, %c-1640531535_i32 : i32
    %c-2048144789_i32 = arith.constant -2048144789 : i32
    %10 = arith.addi %9, %c-2048144789_i32 : i32
    %c1 = arith.constant 1 : index
    %11 = memref.load %arg1[%c1] : memref<2xi32, #tpu.memory_space<smem>>
    %12 = vector.broadcast %11 : i32 to vector<1x1024xi32>
    %13 = tpu.bitcast %12 : vector<1x1024xi32> -> vector<1x1024xf32>
    %14 = vector.broadcast %10 : i32 to vector<1x1024xi32>
    %15 = arith.xori %7, %14 : vector<1x1024xi32>
    %c16_i32 = arith.constant 16 : i32
    %16 = vector.broadcast %c16_i32 : i32 to vector<1x1024xi32>
    %17 = arith.shrui %15, %16 : vector<1x1024xi32>
    %18 = arith.xori %15, %17 : vector<1x1024xi32>
    %c2146121005_i32 = arith.constant 2146121005 : i32
    %19 = vector.broadcast %c2146121005_i32 : i32 to vector<1x1024xi32>
    %20 = arith.muli %18, %19 : vector<1x1024xi32>
    %c15_i32 = arith.constant 15 : i32
    %21 = vector.broadcast %c15_i32 : i32 to vector<1x1024xi32>
    %22 = arith.shrui %20, %21 : vector<1x1024xi32>
    %23 = arith.xori %20, %22 : vector<1x1024xi32>
    %c-2073254261_i32 = arith.constant -2073254261 : i32
    %24 = vector.broadcast %c-2073254261_i32 : i32 to vector<1x1024xi32>
    %25 = arith.muli %23, %24 : vector<1x1024xi32>
    %c16_i32_1 = arith.constant 16 : i32
    %26 = vector.broadcast %c16_i32_1 : i32 to vector<1x1024xi32>
    %27 = arith.shrui %25, %26 : vector<1x1024xi32>
    %28 = arith.xori %25, %27 : vector<1x1024xi32>
    %c1757159915_i32 = arith.constant 1757159915 : i32
    %29 = vector.broadcast %c1757159915_i32 : i32 to vector<1x1024xi32>
    %30 = arith.xori %28, %29 : vector<1x1024xi32>
    %c16_i32_2 = arith.constant 16 : i32
    %31 = vector.broadcast %c16_i32_2 : i32 to vector<1x1024xi32>
    %32 = arith.shrui %30, %31 : vector<1x1024xi32>
    %33 = arith.xori %30, %32 : vector<1x1024xi32>
    %c2146121005_i32_3 = arith.constant 2146121005 : i32
    %34 = vector.broadcast %c2146121005_i32_3 : i32 to vector<1x1024xi32>
    %35 = arith.muli %33, %34 : vector<1x1024xi32>
    %c15_i32_4 = arith.constant 15 : i32
    %36 = vector.broadcast %c15_i32_4 : i32 to vector<1x1024xi32>
    %37 = arith.shrui %35, %36 : vector<1x1024xi32>
    %38 = arith.xori %35, %37 : vector<1x1024xi32>
    %c-2073254261_i32_5 = arith.constant -2073254261 : i32
    %39 = vector.broadcast %c-2073254261_i32_5 : i32 to vector<1x1024xi32>
    %40 = arith.muli %38, %39 : vector<1x1024xi32>
    %c16_i32_6 = arith.constant 16 : i32
    %41 = vector.broadcast %c16_i32_6 : i32 to vector<1x1024xi32>
    %42 = arith.shrui %40, %41 : vector<1x1024xi32>
    %43 = arith.xori %40, %42 : vector<1x1024xi32>
    %c9_i32 = arith.constant 9 : i32
    %44 = vector.broadcast %c9_i32 : i32 to vector<1x1024xi32>
    %45 = arith.shrui %28, %44 : vector<1x1024xi32>
    %c1065353217_i32 = arith.constant 1065353217 : i32
    %46 = vector.broadcast %c1065353217_i32 : i32 to vector<1x1024xi32>
    %47 = arith.ori %45, %46 : vector<1x1024xi32>
    %48 = tpu.bitcast %47 : vector<1x1024xi32> -> vector<1x1024xf32>
    %c9_i32_7 = arith.constant 9 : i32
    %49 = vector.broadcast %c9_i32_7 : i32 to vector<1x1024xi32>
    %50 = arith.shrui %43, %49 : vector<1x1024xi32>
    %c1065353216_i32 = arith.constant 1065353216 : i32
    %51 = vector.broadcast %c1065353216_i32 : i32 to vector<1x1024xi32>
    %52 = arith.ori %50, %51 : vector<1x1024xi32>
    %53 = tpu.bitcast %52 : vector<1x1024xi32> -> vector<1x1024xf32>
    %cst = arith.constant 2.000000e+00 : f32
    %54 = vector.broadcast %cst : f32 to vector<1x1024xf32>
    %55 = arith.subf %54, %48 : vector<1x1024xf32>
    %56 = math.log %55 : vector<1x1024xf32>
    %cst_8 = arith.constant -2.000000e+00 : f32
    %57 = vector.broadcast %cst_8 : f32 to vector<1x1024xf32>
    %58 = arith.mulf %57, %56 : vector<1x1024xf32>
    %59 = math.rsqrt %58 : vector<1x1024xf32>
    %60 = arith.mulf %58, %59 : vector<1x1024xf32>
    %cst_9 = arith.constant 6.28318548 : f32
    %61 = vector.broadcast %cst_9 : f32 to vector<1x1024xf32>
    %62 = arith.mulf %61, %53 : vector<1x1024xf32>
    %63 = math.cos %62 : vector<1x1024xf32>
    %64 = arith.mulf %60, %63 : vector<1x1024xf32>
    %65 = math.sin %62 : vector<1x1024xf32>
    %66 = arith.mulf %60, %65 : vector<1x1024xf32>
    %c0_10 = arith.constant 0 : index
    %c0_11 = arith.constant 0 : index
    %67 = vector.load %arg2[%c0_10, %c0_11] : memref<1x2048xf32, #tpu.memory_space<vmem>>, vector<1x1024xf32>
    %c0_12 = arith.constant 0 : index
    %c1024 = arith.constant 1024 : index
    %68 = vector.load %arg2[%c0_12, %c1024] : memref<1x2048xf32, #tpu.memory_space<vmem>>, vector<1x1024xf32>
    %69 = arith.mulf %13, %64 : vector<1x1024xf32>
    %cst_13 = arith.constant 1.000000e+00 : f32
    %70 = vector.broadcast %cst_13 : f32 to vector<1x1024xf32>
    %71 = arith.addf %70, %69 : vector<1x1024xf32>
    %72 = arith.mulf %67, %71 : vector<1x1024xf32>
    %c0_14 = arith.constant 0 : index
    %c0_15 = arith.constant 0 : index
    %73 = vector.load %arg3[%c0_14, %c0_15] : memref<1x2048xf32, #tpu.memory_space<vmem>>, vector<1x1024xf32>
    tpu.vector_store %arg3[%c0_14, %c0_15], %72 {strides = array<i32>} : memref<1x2048xf32, #tpu.memory_space<vmem>>, vector<1x1024xf32>,
    %74 = arith.mulf %13, %66 : vector<1x1024xf32>
    %cst_16 = arith.constant 1.000000e+00 : f32
    %75 = vector.broadcast %cst_16 : f32 to vector<1x1024xf32>
    %76 = arith.addf %75, %74 : vector<1x1024xf32>
    %77 = arith.mulf %68, %76 : vector<1x1024xf32>
    %c0_17 = arith.constant 0 : index
    %c1024_18 = arith.constant 1024 : index
    %78 = vector.load %arg3[%c0_17, %c1024_18] : memref<1x2048xf32, #tpu.memory_space<vmem>>, vector<1x1024xf32>
    tpu.vector_store %arg3[%c0_17, %c1024_18], %77 {strides = array<i32>} : memref<1x2048xf32, #tpu.memory_space<vmem>>, vector<1x1024xf32>,
    return
  }
  func.func @transform_0(%arg0: i32, %arg1: memref<2xi32, #tpu.memory_space<smem>>) -> (i32, i32) {
    %c0_i32 = arith.constant 0 : i32
    %c0_i32_0 = arith.constant 0 : i32
    return %arg0, %c0_i32 : i32, i32
  }
  func.func @transform_1(%arg0: i32, %arg1: memref<2xi32, #tpu.memory_space<smem>>) -> (i32, i32) {
    %c0_i32 = arith.constant 0 : i32
    %c0_i32_0 = arith.constant 0 : i32
    return %arg0, %c0_i32 : i32, i32
  }
}

</mosaic_0001>

<bundles_post_ra>
// kernel: tpu_custom_call.1
= control target key start
LH: loop header
LB: loop body
LE: loop exit
PB: predicated region body
PF: predicated region fallthrough
CT: control target
= control target key end

     0   :  { %s3548_s0 = inlined_call_operand.hbm [shape: s32[2], index: 0, kind: input, shape index: {}]   ;;  %s3549_s1 = inlined_call_operand.hbm [shape: f32[1,2048], index: 1, kind: input, shape index: {}]   ;;  %s3550_s2 = inlined_call_operand.hbm [shape: f32[1,2048], index: 2, kind: output, shape index: {}]  }
   0x1   :  { %s2316_s11 = scalar_lea.hbm %s3548_s0, 16 }
   0x2   :  { %p2317_p0 = scmp.ne.s32.totalorder %s3548_s0, %s2316_s11  ;;  %p2320_p1 = scmp.lt.u32.totalorder %s2316_s11, %s3548_s0 }
   0x4   :  { %p2322_p2 = pnand %p2320_p1, %p2317_p0 }
   0x6   :  { %2325 = shalt.err (!%p2322_p2)  }
   0x7   :  { %s2376_s16 = smov [#allocation3]  }
   0x8   :  { %8 = dma.hbm_to_smem %s3548_s0, 16, %s2376_s16, [#allocation2] }
   0x9   :  { %2370 = dma.done.wait [#allocation2], 16 }
   0xa   :  { %2371 = vsyncadd [#allocation2], 4294967280 }
   0xb   :  { %10 = sfence }
   0xc   :  { %11 = vsyncpa [#allocation5], 0 }
   0xd   :  { %12 = vsyncpa [#allocation6], 0  ;;  %s2377_s19 = smov [#allocation4]   ;;  %s2326_s23 = scalar_lea.hbm %s3549_s1, 256 }
   0xe   :  { %s19_s20 = sshll.u32 %s2377_s19, 4  ;;  %p2327_p3 = scmp.ne.s32.totalorder %s3549_s1, %s2326_s23  ;;  %s20_s20 = int_to_ptr.vmem [resolvable:$true] %s19_s20 }
   0xf   :  { %p2330_p4 = scmp.lt.u32.totalorder %s2326_s23, %s3549_s1 }
  0x11   :  { %p2332_p5 = pnand %p2330_p4, %p2327_p3 }
  0x13   :  { %2335 = shalt.err (!%p2332_p5)
}
  0x14   :  { %s2336_s0 = scalar_lea.vmem %s20_s20, 256  ;;  %p2341_p7 = scmp.lt.s32.totalorder %s20_s20, %s20_s20 }
  0x15   :  { %p2337_p6 = scmp.ne.s32.totalorder %s20_s20, %s2336_s0  ;;  %p2342_p8 = scmp.lt.s32.totalorder %s2336_s0, %s2336_s0 }
  0x17   :  { %p2343_p9 = por %p2342_p8, %p2341_p7 }
  0x19   :  { %p2344_p10 = pnand %p2343_p9, %p2337_p6 }
  0x1b   :  { %2347 = shalt.err (!%p2344_p10)
}
  0x1c   :  { %22 = dma.hbm_to_vmem [thread:$0]  %s3549_s1, 256, %s20_s20, [#allocation5]  }
  0x1d   :  { %2372 = dma.done.wait [#allocation5], 256  }
  0x1e   :  { %2373 = vsyncadd [#allocation5], 4294967040  ;;  %v27_v0 = vlaneseq  ;;  %s49_s30 = sld [smem:[#allocation3]]  ;;  %s2457_s4 = sld [smem:[#allocation3 + $0x1]] }
  0x1f   :  { %s2385_s5 = smov [#allocation7]  }
  0x20   :  { %v2425_v1 = vshrl.u32 %v27_v0, 7  ;;  %v30_v2 = vand.u32 127, %v27_v0  ;;  %s2136_s6 = sshll.u32 %s2385_s5, 4  ;;  %s2137_s6 = int_to_ptr.vmem [resolvable:$true] %s2136_s6 }
  0x21   :  { %s2348_s7 = scalar_lea.vmem %s2137_s6, 256  ;;  %p2353_p12 = scmp.lt.s32.totalorder %s2137_s6, %s2137_s6 }
  0x22   :  { %3582 = vst [vmem:[#allocation11_spill] sm:$0xff] %v2425_v1  ;;  %v31_v3 = vadd.s32 128, %v30_v2  ;;  %v32_v4 = vadd.s32 256, %v30_v2  ;;  %v33_v5 = vadd.s32 384, %v30_v2  ;;  %v34_v6 = vadd.s32 512, %v30_v2  ;;  %p2349_p11 = scmp.ne.s32.totalorder %s2137_s6, %s2348_s7  ;;  %p2354_p13 = scmp.lt.s32.totalorder %s2348_s7, %s2348_s7 }
  0x23   :  { %v35_v7 = vadd.s32 640, %v30_v2  ;;  %v36_v8 = vadd.s32 768, %v30_v2  ;;  %v37_v9 = vadd.s32 896, %v30_v2  ;;  %v38_v10 = vmul.u32 1024, %v2425_v1 }
  0x24   :  { %s50_s1 = smul.u32 2654435761, %s49_s30  ;;  %p2355_p0 = por %p2354_p13, %p2353_p12 }
  0x25   :  { %v41_v11 = vadd.s32 %v38_v10, %v30_v2  ;;  %v42_v12 = vadd.s32 %v38_v10, %v31_v3  ;;  %v43_v13 = vadd.s32 %v38_v10, %v32_v4  ;;  %v44_v14 = vadd.s32 %v38_v10, %v33_v5 }
  0x26   :  { %v45_v15 = vadd.s32 %v38_v10, %v34_v6  ;;  %v46_v16 = vadd.s32 %v38_v10, %v35_v7  ;;  %v47_v17 = vadd.s32 %v38_v10, %v36_v8  ;;  %v48_v18 = vadd.s32 %v38_v10, %v37_v9  ;;  %s51_s3 = sadd.s32 2246822507, %s50_s1  ;;  %p2356_p1 = pnand %p2355_p0, %p2349_p11 }
  0x27   :  { %v55_v19 = vstv %s51_s3 }
  0x28   :  { %v56_v20 = vxor.u32 %v55_v19, %v41_v11  ;;  %v57_v21 = vxor.u32 %v55_v19, %v42_v12  ;;  %v58_v22 = vxor.u32 %v55_v19, %v43_v13  ;;  %v59_v23 = vxor.u32 %v55_v19, %v44_v14 }
  0x29   :  { %v60_v24 = vxor.u32 %v55_v19, %v45_v15  ;;  %v61_v25 = vxor.u32 %v55_v19, %v46_v16  ;;  %v62_v26 = vxor.u32 %v55_v19, %v47_v17  ;;  %v63_v27 = vxor.u32 %v55_v19, %v48_v18 }
  0x2a   :  { %v64_v28 = vshrl.u32 %v56_v20, 16  ;;  %v65_v29 = vshrl.u32 %v57_v21, 16  ;;  %v66_v30 = vshrl.u32 %v58_v22, 16  ;;  %v67_v31 = vshrl.u32 %v59_v23, 16 }
  0x2b   :  { %v68_v32 = vshrl.u32 %v60_v24, 16  ;;  %v69_v33 = vshrl.u32 %v61_v25, 16  ;;  %v70_v34 = vshrl.u32 %v62_v26, 16  ;;  %v71_v35 = vshrl.u32 %v63_v27, 16 }
  0x2c   :  { %v72_v36 = vxor.u32 %v64_v28, %v56_v20  ;;  %v73_v37 = vxor.u32 %v65_v29, %v57_v21  ;;  %v74_v38 = vxor.u32 %v66_v30, %v58_v22  ;;  %v75_v39 = vxor.u32 %v67_v31, %v59_v23 }
  0x2d   :  { %v76_v40 = vxor.u32 %v68_v32, %v60_v24  ;;  %v77_v41 = vxor.u32 %v69_v33, %v61_v25  ;;  %v78_v42 = vxor.u32 %v70_v34, %v62_v26  ;;  %v79_v43 = vxor.u32 %v71_v35, %v63_v27 }
  0x2e   :  { %v80_v44 = vmul.u32 2146121005, %v72_v36  ;;  %v81_v45 = vmul.u32 2146121005, %v73_v37 }
  0x2f   :  { %v82_v46 = vmul.u32 2146121005, %v74_v38  ;;  %v83_v47 = vmul.u32 2146121005, %v75_v39 }
  0x30   :  { %v84_v48 = vmul.u32 2146121005, %v76_v40  ;;  %v85_v49 = vmul.u32 2146121005, %v77_v41  ;;  %v88_v50 = vshrl.u32 %v80_v44, 15  ;;  %v89_v51 = vshrl.u32 %v81_v45, 15 }
  0x31   :  { %v86_v52 = vmul.u32 2146121005, %v78_v42  ;;  %v87_v53 = vmul.u32 2146121005, %v79_v43  ;;  %v90_v54 = vshrl.u32 %v82_v46, 15  ;;  %v91_v55 = vshrl.u32 %v83_v47, 15 }
  0x32   :  { %v92_v56 = vshrl.u32 %v84_v48, 15  ;;  %v93_v57 = vshrl.u32 %v85_v49, 15  ;;  %v96_v58 = vxor.u32 %v88_v50, %v80_v44  ;;  %v97_v59 = vxor.u32 %v89_v51, %v81_v45 }
  0x33   :  { %v94_v60 = vshrl.u32 %v86_v52, 15  ;;  %v95_v61 = vshrl.u32 %v87_v53, 15  ;;  %v98_v62 = vxor.u32 %v90_v54, %v82_v46  ;;  %v99_v63 = vxor.u32 %v91_v55, %v83_v47 }
  0x34   :  { %v100_v0 = vxor.u32 %v92_v56, %v84_v48  ;;  %v101_v2 = vxor.u32 %v93_v57, %v85_v49  ;;  %v104_v3 = vmul.u32 2221713035, %v96_v58  ;;  %v105_v4 = vmul.u32 2221713035, %v97_v59 }
  0x35   :  { %v102_v5 = vxor.u32 %v94_v60, %v86_v52  ;;  %v103_v6 = vxor.u32 %v95_v61, %v87_v53  ;;  %v106_v7 = vmul.u32 2221713035, %v98_v62  ;;  %v107_v8 = vmul.u32 2221713035, %v99_v63 }
  0x36   :  { %v108_v9 = vmul.u32 2221713035, %v100_v0  ;;  %v109_v10 = vmul.u32 2221713035, %v101_v2  ;;  %v112_v11 = vshrl.u32 %v104_v3, 16  ;;  %v113_v12 = vshrl.u32 %v105_v4, 16 }
  0x37   :  { %v110_v13 = vmul.u32 2221713035, %v102_v5  ;;  %v111_v14 = vmul.u32 2221713035, %v103_v6  ;;  %v114_v15 = vshrl.u32 %v106_v7, 16  ;;  %v115_v16 = vshrl.u32 %v107_v8, 16 }
  0x38   :  { %v116_v17 = vshrl.u32 %v108_v9, 16  ;;  %v117_v18 = vshrl.u32 %v109_v10, 16  ;;  %v2428_v19 = vxor.u32 %v112_v11, %v104_v3  ;;  %v2430_v20 = vxor.u32 %v113_v12, %v105_v4 }
  0x39   :  { %v118_v21 = vshrl.u32 %v110_v13, 16  ;;  %v119_v22 = vshrl.u32 %v111_v14, 16  ;;  %v2432_v23 = vxor.u32 %v114_v15, %v106_v7  ;;  %v2434_v24 = vxor.u32 %v115_v16, %v107_v8 }
  0x3a   :  { %v2436_v25 = vxor.u32 %v116_v17, %v108_v9  ;;  %v2438_v26 = vxor.u32 %v117_v18, %v109_v10  ;;  %v128_v27 = vxor.u32 1757159915, %v2428_v19  ;;  %v129_v28 = vxor.u32 1757159915, %v2430_v20 }
  0x3b   :  { %v2442_v29 = vxor.u32 %v118_v21, %v110_v13  ;;  %v2444_v30 = vxor.u32 %v119_v22, %v111_v14  ;;  %v130_v31 = vxor.u32 1757159915, %v2432_v23  ;;  %v131_v32 = vxor.u32 1757159915, %v2434_v24 }
  0x3c   :  { %v136_v33 = vshrl.u32 %v128_v27, 16  ;;  %v137_v34 = vshrl.u32 %v129_v28, 16  ;;  %v132_v35 = vxor.u32 1757159915, %v2436_v25  ;;  %v133_v36 = vxor.u32 1757159915, %v2438_v26 }
  0x3d   :  { %v138_v37 = vshrl.u32 %v130_v31, 16  ;;  %v134_v40 = vxor.u32 1757159915, %v2442_v29  ;;  %v135_v41 = vxor.u32 1757159915, %v2444_v30  ;;  %v139_v42 = vshrl.u32 %v131_v32, 16 }
  0x3e   :  { %v144_v38 = vxor.u32 %v136_v33, %v128_v27  ;;  %v145_v39 = vxor.u32 %v137_v34, %v129_v28  ;;  %v140_v45 = vshrl.u32 %v132_v35, 16  ;;  %v141_v46 = vshrl.u32 %v133_v36, 16 }
  0x3f   :  { %v146_v47 = vxor.u32 %v138_v37, %v130_v31  ;;  %v142_v50 = vshrl.u32 %v134_v40, 16  ;;  %v143_v51 = vshrl.u32 %v135_v41, 16  ;;  %v147_v52 = vxor.u32 %v139_v42, %v131_v32 }
  0x40   :  { %v152_v43 = vmul.u32 2146121005, %v144_v38  ;;  %v153_v44 = vmul.u32 2146121005, %v145_v39  ;;  %v148_v55 = vxor.u32 %v140_v45, %v132_v35  ;;  %v149_v56 = vxor.u32 %v141_v46, %v133_v36 }
  0x41   :  { %v154_v57 = vmul.u32 2146121005, %v146_v47  ;;  %v150_v59 = vxor.u32 %v142_v50, %v134_v40  ;;  %v151_v61 = vxor.u32 %v143_v51, %v135_v41  ;;  %v155_v62 = vmul.u32 2146121005, %v147_v52 }
  0x42   :  { %v160_v48 = vshrl.u32 %v152_v43, 15  ;;  %v161_v49 = vshrl.u32 %v153_v44, 15  ;;  %v156_v63 = vmul.u32 2146121005, %v148_v55  ;;  %v157_v2 = vmul.u32 2146121005, %v149_v56 }
  0x43   :  { %v162_v3 = vshrl.u32 %v154_v57, 15  ;;  %v158_v4 = vmul.u32 2146121005, %v150_v59  ;;  %v159_v6 = vmul.u32 2146121005, %v151_v61  ;;  %v163_v7 = vshrl.u32 %v155_v62, 15 }
  0x44   :  { %v168_v53 = vxor.u32 %v160_v48, %v152_v43  ;;  %v169_v54 = vxor.u32 %v161_v49, %v153_v44  ;;  %v164_v8 = vshrl.u32 %v156_v63, 15  ;;  %v165_v10 = vshrl.u32 %v157_v2, 15 }
  0x45   :  { %v170_v11 = vxor.u32 %v162_v3, %v154_v57  ;;  %v166_v12 = vshrl.u32 %v158_v4, 15  ;;  %v167_v14 = vshrl.u32 %v159_v6, 15  ;;  %v171_v15 = vxor.u32 %v163_v7, %v155_v62 }
  0x46   :  { %v176_v58 = vmul.u32 2221713035, %v168_v53  ;;  %v177_v60 = vmul.u32 2221713035, %v169_v54  ;;  %v172_v16 = vxor.u32 %v164_v8, %v156_v63  ;;  %v173_v18 = vxor.u32 %v165_v10, %v157_v2 }
  0x47   :  { %v178_v21 = vmul.u32 2221713035, %v170_v11  ;;  %v174_v22 = vxor.u32 %v166_v12, %v158_v4  ;;  %v175_v31 = vxor.u32 %v167_v14, %v159_v6  ;;  %v179_v32 = vmul.u32 2221713035, %v171_v15 }
  0x48   :  { %v184_v0 = vshrl.u32 %v176_v58, 16  ;;  %v185_v5 = vshrl.u32 %v177_v60, 16  ;;  %v180_v33 = vmul.u32 2221713035, %v172_v16  ;;  %v181_v34 = vmul.u32 2221713035, %v173_v18 }
  0x49   :  { %v186_v35 = vshrl.u32 %v178_v21, 16  ;;  %v182_v36 = vmul.u32 2221713035, %v174_v22  ;;  %v183_v39 = vmul.u32 2221713035, %v175_v31  ;;  %v187_v40 = vshrl.u32 %v179_v32, 16 }
  0x4a   :  { %v192_v9 = vxor.u32 %v184_v0, %v176_v58  ;;  %v193_v13 = vxor.u32 %v185_v5, %v177_v60  ;;  %v188_v41 = vshrl.u32 %v180_v33, 16  ;;  %v189_v42 = vshrl.u32 %v181_v34, 16 }
  0x4b   :  { %v194_v43 = vxor.u32 %v186_v35, %v178_v21  ;;  %v190_v44 = vshrl.u32 %v182_v36, 16  ;;  %v191_v47 = vshrl.u32 %v183_v39, 16  ;;  %v195_v48 = vxor.u32 %v187_v40, %v179_v32 }
  0x4c   :  { %v224_v17 = vshrl.u32 %v192_v9, 9  ;;  %v225_v27 = vshrl.u32 %v193_v13, 9  ;;  %v196_v49 = vxor.u32 %v188_v41, %v180_v33  ;;  %v200_v50 = vshrl.u32 %v2428_v19, 9 }
  0x4d   :  { %v201_v51 = vshrl.u32 %v2430_v20, 9  ;;  %v197_v53 = vxor.u32 %v189_v42, %v181_v34  ;;  %v202_v54 = vshrl.u32 %v2432_v23, 9  ;;  %v203_v55 = vshrl.u32 %v2434_v24, 9 }
  0x4e   :  { %v232_v28 = vor.u32 1065353216, %v224_v17  ;;  %v233_v37 = vor.u32 1065353216, %v225_v27  ;;  %v226_v56 = vshrl.u32 %v194_v43, 9  ;;  %v198_v57 = vxor.u32 %v190_v44, %v182_v36 }
  0x4f   :  { %v204_v58 = vshrl.u32 %v2436_v25, 9  ;;  %v2465_v61 = vxor.u32 %v191_v47, %v183_v39  ;;  %v205_v62 = vshrl.u32 %v2438_v26, 9  ;;  %v206_v19 = vshrl.u32 %v2442_v29, 9 }
  0x50   :  { %v2452_v38 = vmul.f32 6.2831855, %v232_v28  ;;  %v2454_v45 = vmul.f32 6.2831855, %v233_v37  ;;  %v207_v63 = vshrl.u32 %v2444_v30, 9  ;;  %v227_v3 = vshrl.u32 %v195_v48, 9 }
  0x51   :  { %v2471_v23 = vor.u32 1065353217, %v200_v50  ;;  %v2473_v24 = vor.u32 1065353217, %v201_v51  ;;  %v2475_v25 = vor.u32 1065353217, %v202_v54  ;;  %v2484_v9 = vstv %s2457_s4 }
  0x52   :  { %v307_v46 = vand.u32 2139095040, %v2452_v38  ;;  %v410_v60 = vand.u32 2139095040, %v2454_v45  ;;  %v304_v20 = vand.u32 2147483647, %v2452_v38  ;;  %v2477_v2 = vor.u32 1065353217, %v203_v55 }
  0x53   :  { %v234_v4 = vor.u32 1065353216, %v226_v56  ;;  %v2479_v5 = vor.u32 1065353217, %v204_v58  ;;  %v228_v26 = vshrl.u32 %v196_v49, 9  ;;  %v229_v6 = vshrl.u32 %v197_v53, 9  ;;  %3583 = vst [vmem:[#allocation12_spill] sm:$0xff] %v2484_v9 }
  0x54   :  { %v308_v52 = vshrl.u32 %v307_v46, 23  ;;  %v411_v29 = vshrl.u32 %v410_v60, 23  ;;  %v230_v7 = vshrl.u32 %v198_v57, 9  ;;  %v311_v30 = vand.u32 8388607, %v304_v20 }
  0x55   :  { %v2486_v10 = vor.u32 1065353217, %v205_v62  ;;  %v2488_v11 = vor.u32 1065353217, %v206_v19  ;;  %v2490_v13 = vor.u32 1065353217, %v207_v63 }
  0x56   :  { %v2146_v59 = vadd.s32 4294967169, %v308_v52  ;;  %v231_v14 = vshrl.u32 %v2465_v61, 9  ;;  %v2493_v15 = vor.u32 1065353216, %v227_v3  ;;  %v2495_v16 = vmul.f32 6.2831855, %v234_v4 }
  0x57   :  { %v2497_v17 = vor.u32 1065353216, %v228_v26  ;;  %v3563_v21 = vand.u32 2147483647, %v2454_v45  ;;  %v2150_v22 = vadd.s32 4294967169, %v411_v29  ;;  %v2500_v27 = vor.u32 1065353216, %v229_v6 }
  0x58   :  { %v314_v0 = vadd.s32 1, %v2146_v59  ;;  %3584 = vst [vmem:[#allocation13_spill] sm:$0xff] %v2495_v16  ;;  %v2502_v28 = vor.u32 1065353216, %v230_v7  ;;  %v312_v31 = vor.u32 8388608, %v311_v30  ;;  %v3567_v32 = vmov 683565275  }
  0x59   :  { %v248_v34 = vsub.f32 2.0, %v2471_v23  ;;  %v249_v35 = vsub.f32 2.0, %v2473_v24  ;;  %v250_v36 = vsub.f32 2.0, %v2475_v25  ;;  %v251_v37 = vsub.f32 2.0, %v2477_v2 }
  0x5a   :  { %vm315_vm0 = vcmp.gt.s32.totalorder %v314_v0, 0  ;;  %v3561_v40 = vmov 2475754826   ;;  %v513_v43 = vand.u32 2139095040, %v2495_v16  ;;  %v3559_v44 = vmov 2131351028  }
  0x5b   :  { %v316_v8 = vsel %vm315_vm0, %v314_v0, 0  ;;  %v414_v48 = vand.u32 8388607, %v3563_v21  ;;  %v417_v49 = vadd.s32 1, %v2150_v22  ;;  %v3557_v51 = vmov 2102212464  }
  0x5c   :  { %v318_v12 = vand.u32 31, %v316_v8  ;;  %v317_v39 = vshrl.u32 %v316_v8, 5  ;;  %v352_v54 = vshll.u32 %v312_v31, 8  ;;  %v3553_v57 = vmov 920167782  }
  0x5d   :  { %v3555_v62 = vmov 1326507024   ;;  %v514_v63 = vshrl.u32 %v513_v43, 23  ;;  %vm418_vm4 = vcmp.gt.s32.totalorder %v417_v49, 0  ;;  %v252_v7 = vsub.f32 2.0, %v2479_v5 }
  0x5e   :  { %v319_v18 = vsub.s32 32, %v318_v12  ;;  %v321_v33 = vshll.u32 %v3567_v32, %v318_v12  ;;  %v324_v42 = vshll.u32 %v3561_v40, %v318_v12  ;;  %v327_v47 = vshll.u32 %v3559_v44, %v318_v12 }
  0x5f   :  { %v330_v53 = vshll.u32 %v3557_v51, %v318_v12  ;;  %v333_v59 = vshll.u32 %v3553_v57, %v318_v12  ;;  %vm336_vm1 = vcmp.lt.s32.totalorder %v317_v39, 1  ;;  %vm338_vm2 = vcmp.lt.s32.totalorder %v317_v39, 3 }
  0x60   :  { %v322_v41 = vshrl.u32 %v3561_v40, %v319_v18  ;;  %v325_v46 = vshrl.u32 %v3559_v44, %v319_v18  ;;  %v328_v52 = vshrl.u32 %v3557_v51, %v319_v18  ;;  %v320_v55 = vshrl.u32 %v3567_v32, %v319_v18 }
  0x61   :  { %v331_v58 = vshrl.u32 %v3553_v57, %v319_v18  ;;  %v334_v19 = vshrl.u32 %v3555_v62, %v319_v18  ;;  %vm339_vm3 = vcmp.lt.s32.totalorder %v317_v39, 4  ;;  %vm337_vm5 = vcmp.lt.s32.totalorder %v317_v39, 2 }
  0x62   :  { %v323_v50 = vor.u32 %v322_v41, %v321_v33  ;;  %v326_v56 = vor.u32 %v325_v46, %v324_v42  ;;  %v329_v60 = vor.u32 %v328_v52, %v327_v47  ;;  %v415_v12 = vor.u32 8388608, %v414_v48 }
  0x63   :  { %v332_v23 = vor.u32 %v331_v58, %v330_v53  ;;  %v335_v24 = vor.u32 %v334_v19, %v333_v59  ;;  %v419_v31 = vsel %vm418_vm4, %v417_v49, 0  ;;  %v2154_v33 = vadd.s32 4294967169, %v514_v63 }
  0x64   :  { %v341_v0 = vsel %vm339_vm3, %v329_v60, 2102212464  ;;  %v344_v3 = vsel %vm336_vm1, %v323_v50, %v326_v56  ;;  %v340_v4 = vsel %vm336_vm1, %v320_v55, %v323_v50  ;;  %v348_v6 = vsel %vm336_vm1, %v326_v56, %v329_v60 }
  0x65   :  { %v342_v26 = vsel %vm338_vm2, %v326_v56, %v341_v0  ;;  %v345_v29 = vsel %vm339_vm3, %v332_v23, 920167782  ;;  %v349_v8 = vsel %vm339_vm3, %v335_v24, 1326507024  ;;  %v253_v47 = vsub.f32 2.0, %v2486_v10 }
  0x66   :  { %v346_v30 = vsel %vm338_vm2, %v329_v60, %v345_v29  ;;  %v350_v22 = vsel %vm338_vm2, %v332_v23, %v349_v8  ;;  %v343_v41 = vsel %vm337_vm5, %v340_v4, %v342_v26  ;;  %v420_v48 = vshrl.u32 %v419_v31, 5 }
  0x67   :  { %v347_v18 = vsel %vm337_vm5, %v344_v3, %v346_v30  ;;  %v351_v42 = vsel %vm337_vm5, %v348_v6, %v350_v22  ;;  %v254_v53 = vsub.f32 2.0, %v2488_v11  ;;  %v255_v55 = vsub.f32 2.0, %v2490_v13 }
  0x68   :  { %v2529_v43 = vmul.u32.u64.low %v352_v54, %v347_v18  ;;  %v2530_v46 = vmul.u32.u64.high %v352_v54, %v347_v18, %v2529_v43  ;;  %v2534_v50 = vmul.u32.u64.low %v352_v54, %v351_v42  ;;  %v2535_v52 = vmul.u32.u64.high %v352_v54, %v351_v42, %v2534_v50 }
  0x69   :  { %2252 = vlog2.f32 %v248_v34  ;;  %v421_v49 = vand.u32 31, %v419_v31  ;;  %v359_v56 = vmul.u32 %v352_v54, %v343_v41  ;;  %v2539_v39 = vshll.u32 %v415_v12, 8 }
  0x6a   :  { %2254 = vlog2.f32 %v249_v35  ;;  %v520_v58 = vadd.s32 1, %v2154_v33  ;;  %v362_v59 = vadd.s32 1, %v2530_v46  ;;  %vm439_vm6 = vcmp.lt.s32.totalorder %v420_v48, 1 }
  0x6b   :  { %v422_v60 = vsub.s32 32, %v421_v49  ;;  %v424_v19 = vshll.u32 %v3567_v32, %v421_v49  ;;  %vm361_vm7 = vc.u32 %v2535_v52, %v2529_v43  ;;  %v427_v63 = vshll.u32 %v3561_v40, %v421_v49 }
  0x6c   :  { %v430_v23 = vshll.u32 %v3559_v44, %v421_v49  ;;  %vm441_vm8 = vcmp.lt.s32.totalorder %v420_v48, 3  ;;  %v363_v34 = vsel %vm361_vm7, %v362_v59, %v2530_v46  ;;  %v433_v4 = vshll.u32 %v3557_v51, %v421_v49 }
  0x6d   :  { %v423_v35 = vshrl.u32 %v3567_v32, %v422_v60  ;;  %v425_v54 = vshrl.u32 %v3561_v40, %v422_v60  ;;  %v428_v24 = vshrl.u32 %v3559_v44, %v422_v60  ;;  %v364_v0 = vadd.s32 %v363_v34, %v359_v56 }
  0x6e   :  { %v431_v3 = vshrl.u32 %v3557_v51, %v422_v60  ;;  %v434_v26 = vshrl.u32 %v3553_v57, %v422_v60  ;;  %v436_v30 = vshll.u32 %v3553_v57, %v421_v49  ;;  %v437_v8 = vshrl.u32 %v3555_v62, %v422_v60 }
  0x6f   :  { %v426_v29 = vor.u32 %v425_v54, %v424_v19  ;;  %v429_v6 = vor.u32 %v428_v24, %v427_v63  ;;  %v365_v12 = vadd.s32 536870912, %v364_v0  ;;  %vm442_vm9 = vcmp.lt.s32.totalorder %v420_v48, 4 }
  0x70   :  { %v432_v18 = vor.u32 %v431_v3, %v430_v23  ;;  %v435_v22 = vor.u32 %v434_v26, %v433_v4  ;;  %v438_v31 = vor.u32 %v437_v8, %v436_v30  ;;  %vm440_vm10 = vcmp.lt.s32.totalorder %v420_v48, 2 }
  0x71   :  { %v447_v33 = vsel %vm439_vm6, %v426_v29, %v429_v6  ;;  %vm521_vm11 = vcmp.gt.s32.totalorder %v520_v58, 0  ;;  %v2557_v41 = vshrl.u32 %v365_v12, 30  ;;  %v443_v42 = vsel %vm439_vm6, %v423_v35, %v426_v29 }
  0x72   :  { %v444_v46 = vsel %vm442_vm9, %v432_v18, 2102212464  ;;  %v448_v50 = vsel %vm442_vm9, %v435_v22, 920167782  ;;  %v451_v60 = vsel %vm439_vm6, %v429_v6, %v432_v18  ;;  %v452_v19 = vsel %vm442_vm9, %v438_v31, 1326507024 }
  0x73   :  { %v2253_v56 = vpop.eup %2252  ;;  %v445_v49 = vsel %vm441_vm8, %v429_v6, %v444_v46  ;;  %v449_v59 = vsel %vm441_vm8, %v432_v18, %v448_v50  ;;  %2256 = vlog2.f32 %v250_v36  ;;  %v367_v23 = vshll.u32 %v2557_v41, 30 }
  0x74   :  { %v2255_v63 = vpop.eup %2254  ;;  %v450_v34 = vsel %vm440_vm10, %v447_v33, %v449_v59  ;;  %v522_v54 = vsel %vm521_vm11, %v520_v58, 0  ;;  %2258 = vlog2.f32 %v251_v37  ;;  %v453_v35 = vsel %vm441_vm8, %v435_v22, %v452_v19 }
  0x75   :  { %v2571_v24 = vmul.u32.u64.low %v2539_v39, %v450_v34  ;;  %v2572_v3 = vmul.u32.u64.high %v2539_v39, %v450_v34, %v2571_v24  ;;  %2260 = vlog2.f32 %v252_v7  ;;  %v2577_v25 = vsub.s32 %v364_v0, %v367_v23 }
  0x76   :  { %v446_v36 = vsel %vm440_vm10, %v443_v42, %v445_v49  ;;  %v454_v4 = vsel %vm440_vm10, %v451_v60, %v453_v35  ;;  %2262 = vlog2.f32 %v253_v47  ;;  %v524_v58 = vand.u32 31, %v522_v54 }
  0x77   :  { %v2584_v2 = vmul.u32.u64.low %v2539_v39, %v454_v4  ;;  %v2585_v37 = vmul.u32.u64.high %v2539_v39, %v454_v4, %v2584_v2  ;;  %v2589_v26 = vor.u32 1065353216, %v231_v14  ;;  %2264 = vlog2.f32 %v254_v53 }
  0x78   :  { %v2594_v5 = vmul.f32 6.2831855, %v2493_v15  ;;  %v370_v7 = vsub.s32 0, %v2577_v25  ;;  %v462_v10 = vmul.u32 %v2539_v39, %v446_v36  ;;  %v465_v47 = vadd.s32 1, %v2572_v3 }
  0x79   :  { %v3552_v48 = vand.u32 2147483647, %v2495_v16  ;;  %v525_v0 = vsub.s32 32, %v524_v58  ;;  %2266 = vlog2.f32 %v255_v55  ;;  %v2603_v61 = vmul.f32 6.2831855, %v2497_v17 }
  0x7a   :  { %v2147_v11 = vmin.u32 %v370_v7, %v2577_v25  ;;  %v2606_v14 = vshrl.u32 %v522_v54, 5  ;;  %vm464_vm12 = vc.u32 %v2585_v37, %v2571_v24  ;;  %v527_v15 = vshll.u32 %v3567_v32, %v524_v58 }
  0x7b   :  { %v528_v53 = vshrl.u32 %v3561_v40, %v525_v0  ;;  %v530_v39 = vshll.u32 %v3561_v40, %v524_v58  ;;  %v466_v13 = vsel %vm464_vm12, %v465_v47, %v2572_v3  ;;  %v531_v55 = vshrl.u32 %v3559_v44, %v525_v0 }
  0x7c   :  { %v372_v29 = vclz %v2147_v11  ;;  %v533_v17 = vshll.u32 %v3559_v44, %v524_v58  ;;  %v467_v6 = vadd.s32 %v466_v13, %v462_v10  ;;  %v517_v30 = vand.u32 8388607, %v3552_v48 }
  0x7d   :  { %v534_v8 = vshrl.u32 %v3557_v51, %v525_v0  ;;  %v536_v12 = vshll.u32 %v3557_v51, %v524_v58  ;;  %v2257_v18 = vpop.eup %2256  ;;  %v257_v22 = vmul.f32 0.6931472, %v2253_v56  ;;  %v537_v33 = vshrl.u32 %v3553_v57, %v525_v0 }
  0x7e   :  { %v2148_v31 = vadd.s32 4294967294, %v372_v29  ;;  %v539_v42 = vshll.u32 %v3553_v57, %v524_v58  ;;  %v2259_v46 = vpop.eup %2258  ;;  %v468_v50 = vadd.s32 536870912, %v467_v6  ;;  %v529_v49 = vor.u32 %v528_v53, %v527_v15 }
  0x7f   :  { %v540_v59 = vshrl.u32 %v3555_v62, %v525_v0  ;;  %vm542_vm13 = vcmp.lt.s32.totalorder %v2606_v14, 1  ;;  %v2261_v60 = vpop.eup %2260  ;;  %v532_v19 = vor.u32 %v531_v55, %v530_v39  ;;  %v535_v23 = vor.u32 %v534_v8, %v533_v17 }
  0x80   :  { %vm2149_vm14 = vcmp.lt.s32.totalorder %v2148_v31, 0  ;;  %v538_v34 = vor.u32 %v537_v33, %v536_v12  ;;  %v2263_v54 = vpop.eup %2262  ;;  %v2626_v56 = vshrl.u32 %v468_v50, 30  ;;  %vm545_vm15 = vcmp.lt.s32.totalorder %v2606_v14, 4 }
  0x81   :  { %v2624_v35 = vsel %vm2149_vm14, 0, %v2148_v31  ;;  %v541_v3 = vor.u32 %v540_v59, %v539_v42  ;;  %v2265_v36 = vpop.eup %2264  ;;  %v259_v4 = vmul.f32 0.6931472, %v2255_v63  ;;  %v518_v2 = vor.u32 8388608, %v517_v30 }
  0x82   :  { %vm544_vm0 = vcmp.lt.s32.totalorder %v2606_v14, 3  ;;  %v3551_v58 = vand.u32 2147483647, %v2594_v5  ;;  %v261_v7 = vmul.f32 0.6931472, %v2257_v18  ;;  %v470_v10 = vshll.u32 %v2626_v56, 30 }
  0x83   :  { %v526_v47 = vshrl.u32 %v3567_v32, %v525_v0  ;;  %vm543_vm1 = vcmp.lt.s32.totalorder %v2606_v14, 2  ;;  %v2267_v11 = vpop.eup %2266  ;;  %v380_v15 = vsub.s32 4294967266, %v2624_v35  ;;  %v547_v53 = vsel %vm545_vm15, %v535_v23, 2102212464 }
  0x84   :  { %v550_v63 = vsel %vm542_vm13, %v529_v49, %v532_v19  ;;  %v551_v39 = vsel %vm545_vm15, %v538_v34, 920167782  ;;  %v2641_v29 = vsub.s32 %v467_v6, %v470_v10  ;;  %v554_v0 = vsel %vm542_vm13, %v532_v19, %v535_v23 }
  0x85   :  { %v552_v13 = vsel %vm544_vm0, %v535_v23, %v551_v39  ;;  %v555_v55 = vsel %vm545_vm15, %v541_v3, 1326507024  ;;  %v263_v17 = vmul.f32 0.6931472, %v2259_v46  ;;  %v2649_v30 = vmul.f32 -2.0, %v257_v22 }
  0x86   :  { %v2651_v8 = vmul.f32 -2.0, %v259_v4  ;;  %v558_v12 = vshll.u32 %v518_v2, 8  ;;  %v473_v18 = vsub.s32 0, %v2641_v29  ;;  %v546_v6 = vsel %vm542_vm13, %v526_v47, %v529_v49 }
  0x87   :  { %v548_v31 = vsel %vm544_vm0, %v532_v19, %v547_v53  ;;  %v556_v33 = vsel %vm544_vm0, %v538_v34, %v555_v55  ;;  %v360_v42 = vadd.s32 %v2529_v43, %v2535_v52  ;;  %v376_v22 = vsub.s32 32, %v2624_v35 }
  0x88   :  { %v553_v46 = vsel %vm543_vm1, %v550_v63, %v552_v13  ;;  %v557_v50 = vsel %vm543_vm1, %v554_v0, %v556_v33  ;;  %v265_v59 = vmul.f32 0.6931472, %v2261_v60  ;;  %v2667_v23 = vmul.f32 -2.0, %v261_v7 }
  0x89   :  { %v381_v49 = vadd.s32 127, %v380_v15  ;;  %v2151_v19 = vmin.u32 %v473_v18, %v2641_v29  ;;  %2268 = vrsqrt.f32 %v2649_v30  ;;  %v549_v34 = vsel %vm543_vm1, %v546_v6, %v548_v31 }
  0x8a   :  { %v2673_v43 = vmul.u32.u64.low %v558_v12, %v557_v50  ;;  %v2674_v52 = vmul.u32.u64.high %v558_v12, %v557_v50, %v2673_v43  ;;  %v2676_v4 = vmul.u32.u64.low %v558_v12, %v553_v46  ;;  %v2677_v2 = vmul.u32.u64.high %v558_v12, %v553_v46, %v2676_v4 }
  0x8b   :  { %v475_v3 = vclz %v2151_v19  ;;  %v616_v60 = vand.u32 2139095040, %v2594_v5  ;;  %v267_v7 = vmul.f32 0.6931472, %v2263_v54  ;;  %v2681_v10 = vmul.f32 -2.0, %v263_v17 }
  0x8c   :  { %v377_v47 = vshll.u32 %v2577_v25, %v2624_v35  ;;  %v378_v15 = vshrl.u32 %v360_v42, %v376_v22  ;;  %2270 = vrsqrt.f32 %v2651_v8  ;;  %v382_v14 = vshll.u32 %v381_v49, 23 }
  0x8d   :  { %v2152_v53 = vadd.s32 4294967294, %v475_v3  ;;  %v617_v63 = vshrl.u32 %v616_v60, 23  ;;  %v269_v39 = vmul.f32 0.6931472, %v2265_v36  ;;  %v2686_v13 = vmul.f32 -2.0, %v265_v59 }
  0x8e   :  { %2272 = vrsqrt.f32 %v2667_v23  ;;  %v565_v0 = vmul.u32 %v558_v12, %v549_v34  ;;  %vm567_vm3 = vc.u32 %v2674_v52, %v2676_v4  ;;  %v568_v54 = vadd.s32 1, %v2677_v2 }
  0x8f   :  { %vm2153_vm2 = vcmp.lt.s32.totalorder %v2152_v53, 0  ;;  %v2158_v55 = vadd.s32 4294967169, %v617_v63  ;;  %v271_v25 = vmul.f32 0.6931472, %v2267_v11  ;;  %v2692_v35 = vmul.f32 -2.0, %v267_v7 }
  0x90   :  { %v379_v17 = vor.u32 %v378_v15, %v377_v47  ;;  %v478_v18 = vsel %vm2153_vm2, 0, %v2152_v53  ;;  %2274 = vrsqrt.f32 %v2681_v10  ;;  %v383_v36 = vor.u32 4788187, %v382_v14 }
  0x91   :  { %v483_v6 = vsub.s32 4294967266, %v478_v18  ;;  %v719_v31 = vand.u32 2139095040, %v2603_v61  ;;  %v463_v12 = vadd.s32 %v2571_v24, %v2585_v37  ;;  %v479_v33 = vsub.s32 32, %v478_v18 }
  0x92   :  { %v569_v42 = vsel %vm567_vm3, %v568_v54, %v2677_v2  ;;  %v623_v22 = vadd.s32 1, %v2158_v55  ;;  %v2699_v46 = vmul.f32 -2.0, %v269_v39  ;;  %2276 = vrsqrt.f32 %v2686_v13 }
  0x93   :  { %v484_v11 = vadd.s32 127, %v483_v6  ;;  %v570_v50 = vadd.s32 %v569_v42, %v565_v0  ;;  %v2702_v59 = vpop.eup %2268  ;;  %v2704_v49 = vmul.f32 -2.0, %v271_v25  ;;  %2278 = vrsqrt.f32 %v2692_v35 }
  0x94   :  { %3585 = vst [vmem:[#allocation14_spill] sm:$0xff] %v2699_v46  ;;  %v386_v19 = vcvt.s32.f32 %v379_v17  ;;  %vm624_vm4 = vcmp.gt.s32.totalorder %v623_v22, 0  ;;  %v384_v34 = vand.u32 2147483647, %v383_v36  ;;  %v720_v43 = vshrl.u32 %v719_v31, 23 }
  0x95   :  { %3586 = vst [vmem:[#allocation15_spill] sm:$0xff] %v2704_v49  ;;  %v571_v24 = vadd.s32 536870912, %v570_v50  ;;  %v625_v37 = vsel %vm624_vm4, %v623_v22, 0  ;;  %v480_v3 = vshll.u32 %v2641_v29, %v478_v18  ;;  %v481_v2 = vshrl.u32 %v463_v12, %v479_v33 }
  0x96   :  { %v485_v60 = vshll.u32 %v484_v11, 23  ;;  %v627_v7 = vand.u32 31, %v625_v37  ;;  %v2708_v47 = vpop.eup %2270  ;;  %2280 = vrsqrt.f32 %v2699_v46  ;;  %v2712_v15 = vmul.f32 6.2831855, %v2500_v27 }
  0x97   :  { %v2715_v14 = vmul.f32 6.2831855, %v2502_v28  ;;  %v2717_v53 = vshrl.u32 %v571_v24, 30  ;;  %2282 = vrsqrt.f32 %v2704_v49  ;;  %v2723_v29 = vmul.f32 6.2831855, %v2589_v26 }
  0x98   :  { %v2719_v63 = vpop.eup %2272  ;;  %vm306_vm5 = vcmp.lt.s32.totalorder %v2452_v38, 0  ;;  %v628_v39 = vsub.s32 32, %v627_v7  ;;  %v390_v0 = vsub.s32 4, %v2557_v41  ;;  %v620_v28 = vand.u32 8388607, %v3551_v58 }
  0x99   :  { %v573_v27 = vshll.u32 %v2717_v53, 30  ;;  %v2162_v54 = vadd.s32 4294967169, %v720_v43  ;;  %v387_v55 = vmul.f32 %v386_v19, %v384_v34  ;;  %v482_v25 = vor.u32 %v481_v2, %v480_v3 }
  0x9a   :  { %v486_v17 = vor.u32 4788187, %v485_v60  ;;  %v630_v18 = vshll.u32 %v3567_v32, %v627_v7  ;;  %v2731_v36 = vpop.eup %2274  ;;  %v633_v6 = vshll.u32 %v3561_v40, %v627_v7  ;;  %v636_v31 = vshll.u32 %v3559_v44, %v627_v7 }
  0x9b   :  { %v2733_v26 = vsub.s32 %v570_v50, %v573_v27  ;;  %v639_v12 = vshll.u32 %v3557_v51, %v627_v7  ;;  %v631_v33 = vshrl.u32 %v3561_v40, %v628_v39  ;;  %v634_v42 = vshrl.u32 %v3559_v44, %v628_v39 }
  0x9c   :  { %v637_v22 = vshrl.u32 %v3557_v51, %v628_v39  ;;  %v640_v11 = vshrl.u32 %v3553_v57, %v628_v39  ;;  %v2742_v19 = vpop.eup %2276  ;;  %v621_v50 = vor.u32 8388608, %v620_v28  ;;  %v626_v24 = vshrl.u32 %v625_v37, 5 }
  0x9d   :  { %v576_v34 = vsub.s32 0, %v2733_v26  ;;  %v726_v43 = vadd.s32 1, %v2162_v54  ;;  %v2745_v3 = vpop.eup %2278  ;;  %v487_v2 = vand.u32 2147483647, %v486_v17  ;;  %v489_v60 = vcvt.s32.f32 %v482_v25 }
  0x9e   :  { %v642_v27 = vshll.u32 %v3553_v57, %v627_v7  ;;  %v643_v58 = vshrl.u32 %v3555_v62, %v628_v39  ;;  %vm2751_vm6 = vcmp.le.f32.partialorder %v304_v20, 0.7853982  ;;  %v391_v28 = vsel %vm306_vm5, %v390_v0, %v2557_v41 }
  0x9f   :  { %v2155_v37 = vmin.u32 %v576_v34, %v2733_v26  ;;  %v629_v54 = vshrl.u32 %v3567_v32, %v628_v39  ;;  %v3566_v25 = vand.u32 2147483647, %v2603_v61  ;;  %v632_v17 = vor.u32 %v631_v33, %v630_v18 }
  0xa0   :  { %v635_v7 = vor.u32 %v634_v42, %v633_v6  ;;  %v638_v57 = vor.u32 %v637_v22, %v636_v31  ;;  %v641_v62 = vor.u32 %v640_v11, %v639_v12  ;;  %v2761_v51 = vpop.eup %2280  ;;  %v388_v20 = vxor.u32 2147483648, %v387_v55 }
  0xa1   :  { %3589 = vst [vmem:[#allocation16_spill] sm:$0xff] %v2761_v51  ;;  %v578_v44 = vclz %v2155_v37  ;;  %v644_v40 = vor.u32 %v643_v58, %v642_v27  ;;  %v661_v21 = vshll.u32 %v621_v50, 8  ;;  %v2763_v49 = vpop.eup %2282  ;;  %vm409_vm7 = vcmp.lt.s32.totalorder %v2454_v45, 0 }
  0xa2   :  { %3590 = vst [vmem:[#allocation17_spill] sm:$0xff] %v2763_v49  ;;  %v490_v41 = vmul.f32 %v489_v60, %v487_v2  ;;  %vm645_vm8 = vcmp.lt.s32.totalorder %v626_v24, 1  ;;  %vm646_vm9 = vcmp.lt.s32.totalorder %v626_v24, 2  ;;  %vm727_vm10 = vcmp.gt.s32.totalorder %v726_v43, 0 }
  0xa3   :  { %v2156_v39 = vadd.s32 4294967294, %v578_v44  ;;  %vm647_vm11 = vcmp.lt.s32.totalorder %v626_v24, 3  ;;  %vm648_vm12 = vcmp.lt.s32.totalorder %v626_v24, 4  ;;  %v649_v0 = vsel %vm645_vm8, %v629_v54, %v632_v17 }
  0xa4   :  { %v650_v18 = vsel %vm648_vm12, %v638_v57, 2102212464  ;;  %v653_v6 = vsel %vm645_vm8, %v632_v17, %v635_v7  ;;  %v654_v31 = vsel %vm648_vm12, %v641_v62, 920167782  ;;  %v657_v12 = vsel %vm645_vm8, %v635_v7, %v638_v57 }
  0xa5   :  { %vm2157_vm13 = vcmp.lt.s32.totalorder %v2156_v39, 0  ;;  %v651_v33 = vsel %vm647_vm11, %v635_v7, %v650_v18  ;;  %v655_v58 = vsel %vm647_vm11, %v638_v57, %v654_v31  ;;  %v658_v42 = vsel %vm648_vm12, %v644_v40, 1326507024 }
  0xa6   :  { %v389_v22 = vsel %vm306_vm5, %v388_v20, %v387_v55  ;;  %v3591_v11 = vand.u32 2147483647, %v2454_v45  ;;  %v581_v44 = vsel %vm2157_vm13, 0, %v2156_v39  ;;  %v656_v50 = vsel %vm646_vm9, %v653_v6, %v655_v58 }
  0xa7   :  { %v659_v2 = vsel %vm647_vm11, %v641_v62, %v658_v42  ;;  %v586_v60 = vsub.s32 4294967266, %v581_v44  ;;  %v652_v27 = vsel %vm646_vm9, %v649_v0, %v651_v33  ;;  %v728_v40 = vsel %vm727_vm10, %v726_v43, 0 }
  0xa8   :  { %vm2770_vm14 = vcmp.le.f32.partialorder %v3591_v11, 0.7853982  ;;  %v660_v37 = vsel %vm646_vm9, %v657_v12, %v659_v2  ;;  %v2781_v55 = vmul.u32.u64.low %v661_v21, %v656_v50  ;;  %v2782_v17 = vmul.u32.u64.high %v661_v21, %v656_v50, %v2781_v55 }
  0xa9   :  { %v2778_v57 = vmul.u32.u64.low %v661_v21, %v660_v37  ;;  %v2779_v54 = vmul.u32.u64.high %v661_v21, %v660_v37, %v2778_v57  ;;  %v2787_v7 = vmul.f32 %v2702_v59, %v2649_v30  ;;  %v491_v20 = vxor.u32 2147483648, %v490_v41 }
  0xaa   :  { %v493_v62 = vsub.s32 4, %v2626_v56  ;;  %v566_v24 = vadd.s32 %v2676_v4, %v2674_v52  ;;  %v392_v43 = vsel %vm2751_vm6, %v2452_v38, %v389_v22  ;;  %v582_v39 = vsub.s32 32, %v581_v44 }
  0xab   :  { %v587_v0 = vadd.s32 127, %v586_v60  ;;  %v730_v18 = vand.u32 31, %v728_v40  ;;  %v2797_v6 = vmul.f32 %v2708_v47, %v2651_v8  ;;  %v2801_v30 = vmul.f32 %v2719_v63, %v2667_v23 }
  0xac   :  { %v2805_v59 = vsel %vm2751_vm6, 0, %v391_v28  ;;  %v668_v52 = vmul.u32 %v661_v21, %v652_v27  ;;  %vm670_vm15 = vc.u32 %v2779_v54, %v2781_v55  ;;  %v671_v31 = vadd.s32 1, %v2782_v17 }
  0xad   :  { %v2808_v4 = vand.u32 3, %v2805_v59  ;;  %v723_v8 = vand.u32 8388607, %v3566_v25  ;;  %2284 = vcosq.f32 %v392_v43  ;;  %v492_v23 = vsel %vm409_vm7, %v491_v20, %v490_v41 }
  0xae   :  { %v494_v48 = vsel %vm409_vm7, %v493_v62, %v2626_v56  ;;  %v731_v21 = vsub.s32 32, %v730_v18  ;;  %v583_v47 = vshll.u32 %v2733_v26, %v581_v44  ;;  %v584_v63 = vshrl.u32 %v566_v24, %v582_v39 }
  0xaf   :  { %v588_v28 = vshll.u32 %v587_v0, 23  ;;  %v672_v12 = vsel %vm670_vm15, %v671_v31, %v2782_v17  ;;  %2286 = vsinq.f32 %v392_v43  ;;  %v733_v58 = vshll.u32 %v3567_v32, %v730_v18 }
  0xb0   :  { %v673_v33 = vadd.s32 %v672_v12, %v668_v52  ;;  %v3594_v42 = vmov 2475754826   ;;  %v724_v11 = vor.u32 8388608, %v723_v8  ;;  %v729_v50 = vshrl.u32 %v728_v40, 5 }
  0xb1   :  { %v736_v22 = vshll.u32 %v3594_v42, %v730_v18  ;;  %v734_v41 = vshrl.u32 %v3594_v42, %v731_v21  ;;  %v3595_v2 = vmov 2131351028   ;;  %v495_v56 = vsel %vm2770_vm14, %v2454_v45, %v492_v23 }
  0xb2   :  { %v737_v60 = vshrl.u32 %v3595_v2, %v731_v21  ;;  %v674_v26 = vadd.s32 536870912, %v673_v33  ;;  %v739_v44 = vshll.u32 %v3595_v2, %v730_v18  ;;  %v3596_v27 = vmov 2102212464  }
  0xb3   :  { %v740_v37 = vshrl.u32 %v3596_v27, %v731_v21  ;;  %v585_v57 = vor.u32 %v584_v63, %v583_v47  ;;  %v589_v17 = vor.u32 4788187, %v588_v28  ;;  %v742_v20 = vshll.u32 %v3596_v27, %v730_v18 }
  0xb4   :  { %v3597_v62 = vmov 920167782   ;;  %v2833_v40 = vshrl.u32 %v674_v26, 30  ;;  %v735_v43 = vor.u32 %v734_v41, %v733_v58  ;;  %v738_v39 = vor.u32 %v737_v60, %v736_v22 }
  0xb5   :  { %v743_v24 = vshrl.u32 %v3597_v62, %v731_v21  ;;  %v745_v0 = vshll.u32 %v3597_v62, %v730_v18  ;;  %2288 = vcosq.f32 %v495_v56  ;;  %v3598_v31 = vmov 1326507024  }
  0xb6   :  { %v746_v8 = vshrl.u32 %v3598_v31, %v731_v21  ;;  %vm748_vm0 = vcmp.lt.s32.totalorder %v729_v50, 1  ;;  %2290 = vsinq.f32 %v495_v56  ;;  %v676_v23 = vshll.u32 %v2833_v40, 30 }
  0xb7   :  { %v744_v52 = vor.u32 %v743_v24, %v742_v20  ;;  %v741_v47 = vor.u32 %v740_v37, %v739_v44  ;;  %vm751_vm1 = vcmp.lt.s32.totalorder %v729_v50, 4  ;;  %vm512_vm2 = vcmp.lt.s32.totalorder %v2495_v16, 0  ;;  %v2839_v12 = vpop.eup %2284 }
  0xb8   :  { %v592_v63 = vcvt.s32.f32 %v585_v57  ;;  %v747_v28 = vor.u32 %v746_v8, %v745_v0  ;;  %vm749_vm3 = vcmp.lt.s32.totalorder %v729_v50, 2  ;;  %vm750_vm4 = vcmp.lt.s32.totalorder %v729_v50, 3 }
  0xb9   :  { %v590_v58 = vand.u32 2147483647, %v589_v17  ;;  %v2841_v18 = vsub.s32 %v673_v33, %v676_v23  ;;  %v732_v22 = vshrl.u32 %v3567_v32, %v731_v21  ;;  %v756_v41 = vsel %vm748_vm0, %v735_v43, %v738_v39  ;;  %v2851_v37 = vpop.eup %2286 }
  0xba   :  { %v2847_v60 = vsel %vm2770_vm14, 0, %v494_v48  ;;  %v753_v56 = vsel %vm751_vm1, %v741_v47, 2102212464  ;;  %v757_v26 = vsel %vm751_vm1, %v744_v52, 920167782  ;;  %v764_v44 = vshll.u32 %v724_v11, 8 }
  0xbb   :  { %v2855_v57 = vmul.f32 %v2731_v36, %v2681_v10  ;;  %v2858_v33 = vand.u32 3, %v2847_v60  ;;  %v679_v21 = vsub.s32 0, %v2841_v18  ;;  %v758_v34 = vsel %vm750_vm4, %v741_v47, %v757_v26 }
  0xbc   :  { %vm399_vm5 = vcmp.eq.s32.totalorder %v2808_v4, 0  ;;  %v596_v48 = vsub.s32 4, %v2717_v53  ;;  %v759_v17 = vsel %vm749_vm3, %v756_v41, %v758_v34  ;;  %v760_v11 = vsel %vm748_vm0, %v738_v39, %v741_v47 }
  0xbd   :  { %v761_v20 = vsel %vm751_vm1, %v747_v28, 1326507024  ;;  %v593_v24 = vmul.f32 %v592_v63, %v590_v58  ;;  %v2159_v10 = vmin.u32 %v679_v21, %v2841_v18  ;;  %v752_v36 = vsel %vm748_vm0, %v732_v22, %v735_v43 }
  0xbe   :  { %v754_v0 = vsel %vm750_vm4, %v738_v39, %v753_v56  ;;  %v3599_v8 = vand.u32 2147483647, %v2495_v16  ;;  %v762_v26 = vsel %vm750_vm4, %v744_v52, %v761_v20  ;;  %v822_v47 = vand.u32 2139095040, %v2712_v15 }
  0xbf   :  { %v2877_v41 = vmul.u32.u64.low %v764_v44, %v759_v17  ;;  %v2878_v34 = vmul.u32.u64.high %v764_v44, %v759_v17, %v2877_v41  ;;  %vm402_vm7 = vcmp.eq.s32.totalorder %v2808_v4, 2  ;;  %v3565_v43 = vxor.u32 2147483648, %v2839_v12  ;;  %v2885_v28 = vpop.eup %2288 }
  0xc0   :  { %vm2872_vm6 = vcmp.le.f32.partialorder %v3599_v8, 0.7853982  ;;  %v681_v63 = vclz %v2159_v10  ;;  %v763_v39 = vsel %vm749_vm3, %v760_v11, %v762_v26  ;;  %v755_v58 = vsel %vm749_vm3, %v752_v36, %v754_v0  ;;  %v2891_v21 = vpop.eup %2290 }
  0xc1   :  { %v2888_v22 = vmul.u32.u64.low %v764_v44, %v763_v39  ;;  %v2889_v56 = vmul.u32.u64.high %v764_v44, %v763_v39, %v2888_v22  ;;  %v823_v52 = vshrl.u32 %v822_v47, 23  ;;  %vm398_vm8 = vcmp.lt.s32.totalorder %v2808_v4, 2 }
  0xc2   :  { %vm501_vm9 = vcmp.lt.s32.totalorder %v2858_v33, 2  ;;  %vm502_vm10 = vcmp.eq.s32.totalorder %v2858_v33, 0  ;;  %vm505_vm11 = vcmp.eq.s32.totalorder %v2858_v33, 2  ;;  %v597_v17 = vsel %vm512_vm2, %v596_v48, %v2717_v53 }
  0xc3   :  { %v2160_v50 = vadd.s32 4294967294, %v681_v63  ;;  %v3571_v11 = vxor.u32 2147483648, %v2851_v37  ;;  %v594_v20 = vxor.u32 2147483648, %v593_v24  ;;  %v774_v10 = vadd.s32 1, %v2878_v34 }
  0xc4   :  { %v2166_v36 = vadd.s32 4294967169, %v823_v52  ;;  %v404_v0 = vsel %vm402_vm7, %v3565_v43, %v2851_v37  ;;  %v669_v8 = vadd.s32 %v2781_v55, %v2779_v54  ;;  %v771_v26 = vmul.u32 %v764_v44, %v755_v58 }
  0xc5   :  { %vm2161_vm12 = vcmp.lt.s32.totalorder %v2160_v50, 0  ;;  %v3570_v53 = vxor.u32 2147483648, %v2891_v21  ;;  %v3569_v48 = vxor.u32 2147483648, %v2885_v28  ;;  %vm773_vm13 = vc.u32 %v2889_v56, %v2877_v41 }
  0xc6   :  { %v684_v47 = vsel %vm2161_vm12, 0, %v2160_v50  ;;  %v3572_v22 = vand.u32 2147483647, %v2712_v15  ;;  %v925_v52 = vand.u32 2139095040, %v2715_v14  ;;  %v595_v43 = vsel %vm512_vm2, %v594_v20, %v593_v24 }
  0xc7   :  { %v685_v63 = vsub.s32 32, %v684_v47  ;;  %v689_v39 = vsub.s32 4294967266, %v684_v47  ;;  %v686_v54 = vshll.u32 %v2841_v18, %v684_v47  ;;  %v775_v55 = vsel %vm773_vm13, %v774_v10, %v2878_v34 }
  0xc8   :  { %v829_v44 = vadd.s32 1, %v2166_v36  ;;  %v401_v58 = vsel %vm399_vm5, %v2839_v12, %v3571_v11  ;;  %v776_v32 = vadd.s32 %v775_v55, %v771_v26  ;;  %v504_v24 = vsel %vm502_vm10, %v2885_v28, %v3570_v53 }
  0xc9   :  { %v687_v50 = vshrl.u32 %v669_v8, %v685_v63  ;;  %v690_v25 = vadd.s32 127, %v689_v39  ;;  %v507_v18 = vsel %vm505_vm11, %v3569_v48, %v2891_v21  ;;  %v699_v34 = vsub.s32 4, %v2833_v40 }
  0xca   :  { %vm830_vm14 = vcmp.gt.s32.totalorder %v829_v44, 0  ;;  %v598_v20 = vsel %vm2872_vm6, %v2495_v16, %v595_v43  ;;  %v777_v36 = vadd.s32 536870912, %v776_v32  ;;  %v926_v8 = vshrl.u32 %v925_v52, 23 }
  0xcb   :  { %v691_v10 = vshll.u32 %v690_v25, 23  ;;  %v2940_v26 = vmul.f32 %v2742_v19, %v2686_v13  ;;  %v688_v47 = vor.u32 %v687_v50, %v686_v54  ;;  %v826_v63 = vand.u32 8388607, %v3572_v22 }
  0xcc   :  { %v831_v39 = vsel %vm830_vm14, %v829_v44, 0  ;;  %v2946_v55 = vsel %vm2872_vm6, 0, %v597_v17  ;;  %vm615_vm15 = vcmp.lt.s32.totalorder %v2594_v5, 0  ;;  %v2949_v43 = vshrl.u32 %v777_v36, 30 }
  0xcd   :  { %v692_v48 = vor.u32 4788187, %v691_v10  ;;  %v2953_v25 = vsel %vm398_vm8, %v401_v58, %v404_v0  ;;  %v2957_v13 = vsel %vm501_vm9, %v504_v24, %v507_v18  ;;  %2292 = vcosq.f32 %v598_v20 }
  0xce   :  { %v833_v19 = vand.u32 31, %v831_v39  ;;  %v2962_v23 = vsel %vm615_vm15, %v699_v34, %v2833_v40  ;;  %v779_v17 = vshll.u32 %v2949_v43, 30  ;;  %v3573_v52 = vand.u32 2147483647, %v2715_v14 }
  0xcf   :  { %v2170_v54 = vadd.s32 4294967169, %v926_v8  ;;  %v693_v44 = vand.u32 2147483647, %v692_v48  ;;  %v695_v4 = vcvt.s32.f32 %v688_v47  ;;  %v827_v0 = vor.u32 8388608, %v826_v63 }
  0xd0   :  { %v834_v58 = vsub.s32 32, %v833_v19  ;;  %v2966_v50 = vsub.s32 %v776_v32, %v779_v17  ;;  %v832_v33 = vshrl.u32 %v831_v39, 5  ;;  %v3602_v24 = vmov 683565275  }
  0xd1   :  { %v836_v18 = vshll.u32 %v3602_v24, %v833_v19  ;;  %v839_v10 = vshll.u32 %v3594_v42, %v833_v19  ;;  %v842_v34 = vshll.u32 %v3595_v2, %v833_v19  ;;  %v845_v53 = vshll.u32 %v3596_v27, %v833_v19 }
  0xd2   :  { %v837_v36 = vshrl.u32 %v3594_v42, %v834_v58  ;;  %v840_v40 = vshrl.u32 %v3595_v2, %v834_v58  ;;  %2294 = vsinq.f32 %v598_v20  ;;  %v782_v48 = vsub.s32 0, %v2966_v50 }
  0xd3   :  { %v843_v8 = vshrl.u32 %v3596_v27, %v834_v58  ;;  %v932_v32 = vadd.s32 1, %v2170_v54  ;;  %v696_v47 = vmul.f32 %v695_v4, %v693_v44  ;;  %v846_v63 = vshrl.u32 %v3597_v62, %v834_v58 }
  0xd4   :  { %v2977_v39 = vshll.u32 %v827_v0, 8  ;;  %v2981_v17 = vand.u32 8388607, %v3573_v52  ;;  %vm396_vm0 = vweird.f32 %v2452_v38  ;;  %vm499_vm1 = vweird.f32 %v2454_v45 }
  0xd5   :  { %v2163_v20 = vmin.u32 %v782_v48, %v2966_v50  ;;  %v838_v11 = vor.u32 %v837_v36, %v836_v18  ;;  %v841_v22 = vor.u32 %v840_v40, %v839_v10  ;;  %v848_v49 = vshll.u32 %v3597_v62, %v833_v19 }
  0xd6   :  { %v3603_v54 = vand.u32 2147483647, %v2594_v5  ;;  %v835_v4 = vshrl.u32 %v3602_v24, %v834_v58  ;;  %v844_v0 = vor.u32 %v843_v8, %v842_v34  ;;  %v847_v52 = vor.u32 %v846_v63, %v845_v53 }
  0xd7   :  { %vm851_vm3 = vcmp.lt.s32.totalorder %v832_v33, 1  ;;  %v772_v51 = vadd.s32 %v2877_v41, %v2889_v56  ;;  %v784_v46 = vclz %v2163_v20  ;;  %v849_v18 = vshrl.u32 %v3598_v31, %v834_v58  ;;  %v2997_v10 = vpop.eup %2292 }
  0xd8   :  { %vm2989_vm2 = vcmp.le.f32.partialorder %v3603_v54, 0.7853982  ;;  %vm933_vm4 = vcmp.gt.s32.totalorder %v932_v32, 0  ;;  %v697_v19 = vxor.u32 2147483648, %v696_v47  ;;  %vm852_vm5 = vcmp.lt.s32.totalorder %v832_v33, 2 }
  0xd9   :  { %vm853_vm6 = vcmp.lt.s32.totalorder %v832_v33, 3  ;;  %vm854_vm7 = vcmp.lt.s32.totalorder %v832_v33, 4  ;;  %v2164_v36 = vadd.s32 4294967294, %v784_v46  ;;  %v850_v40 = vor.u32 %v849_v18, %v848_v49 }
  0xda   :  { %v856_v48 = vsel %vm854_vm7, %v844_v0, 2102212464  ;;  %v859_v34 = vsel %vm851_vm3, %v838_v11, %v841_v22  ;;  %v855_v53 = vsel %vm851_vm3, %v835_v4, %v838_v11  ;;  %v860_v41 = vsel %vm854_vm7, %v847_v52, 920167782 }
  0xdb   :  { %v857_v8 = vsel %vm853_vm6, %v841_v22, %v856_v48  ;;  %v863_v56 = vsel %vm851_vm3, %v841_v22, %v844_v0  ;;  %vm2165_vm8 = vcmp.lt.s32.totalorder %v2164_v36, 0  ;;  %v861_v58 = vsel %vm853_vm6, %v844_v0, %v860_v41 }
  0xdc   :  { %v864_v63 = vsel %vm854_vm7, %v850_v40, 1326507024  ;;  %v934_v20 = vsel %vm933_vm4, %v932_v32, 0  ;;  %v698_v46 = vsel %vm615_vm15, %v697_v19, %v696_v47  ;;  %v787_v49 = vsel %vm2165_vm8, 0, %v2164_v36  ;;  %v3009_v11 = vpop.eup %2294 }
  0xdd   :  { %v862_v54 = vsel %vm852_vm5, %v859_v34, %v861_v58  ;;  %v865_v18 = vsel %vm853_vm6, %v847_v52, %v864_v63  ;;  %v788_v4 = vsub.s32 32, %v787_v49  ;;  %v792_v48 = vsub.s32 4294967266, %v787_v49 }
  0xde   :  { %v858_v22 = vsel %vm852_vm5, %v855_v53, %v857_v8  ;;  %v866_v1 = vsel %vm852_vm5, %v863_v56, %v865_v18  ;;  %v3018_v32 = vmul.u32.u64.low %v2977_v39, %v862_v54  ;;  %v3019_v47 = vmul.u32.u64.high %v2977_v39, %v862_v54, %v3018_v32 }
  0xdf   :  { %v3014_v0 = vmul.u32.u64.low %v2977_v39, %v866_v1  ;;  %v3015_v40 = vmul.u32.u64.high %v2977_v39, %v866_v1, %v3014_v0  ;;  %v789_v19 = vshll.u32 %v2966_v50, %v787_v49  ;;  %v790_v52 = vshrl.u32 %v772_v51, %v788_v4 }
  0xe0   :  { %v793_v36 = vadd.s32 127, %v792_v48  ;;  %v936_v34 = vand.u32 31, %v934_v20  ;;  %v3025_v41 = vmul.f32 %v2745_v3, %v2692_v35  ;;  %v3030_v33 = vsel %vm396_vm0, nan, %v2953_v25 }
  0xe1   :  { %v3035_v1 = vsel %vm499_vm1, nan, %v2957_v13  ;;  %v3038_v53 = vand.u32 3, %v2946_v55  ;;  %v701_v51 = vsel %vm2989_vm2, %v2594_v5, %v698_v46  ;;  %v874_v35 = vmul.u32 %v2977_v39, %v858_v22 }
  0xe2   :  { %3606 = vst [vmem:[#allocation18_spill] sm:$0xff] %v3025_v41  ;;  %v794_v50 = vshll.u32 %v793_v36, 23  ;;  %v937_v3 = vsub.s32 32, %v936_v34  ;;  %v3047_v25 = vsel %vm2989_vm2, 0, %v2962_v23  ;;  %vm876_vm9 = vc.u32 %v3015_v40, %v3018_v32 }
  0xe3   :  { %v877_v13 = vadd.s32 1, %v3019_v47  ;;  %v3052_v8 = vshrl.u32 %v934_v20, 5  ;;  %v3055_v56 = vand.u32 3, %v3047_v25  ;;  %v791_v58 = vor.u32 %v790_v52, %v789_v19 }
  0xe4   :  { %v930_v63 = vor.u32 8388608, %v2981_v17  ;;  %v939_v39 = vshll.u32 %v3602_v24, %v936_v34  ;;  %vm608_vm10 = vcmp.eq.s32.totalorder %v3038_v53, 2  ;;  %2296 = vcosq.f32 %v701_v51 }
  0xe5   :  { %v878_v23 = vsel %vm876_vm9, %v877_v13, %v3019_v47  ;;  %v940_v44 = vshrl.u32 %v3594_v42, %v937_v3  ;;  %v942_v46 = vshll.u32 %v3594_v42, %v936_v34  ;;  %vm605_vm11 = vcmp.eq.s32.totalorder %v3038_v53, 0 }
  0xe6   :  { %2298 = vsinq.f32 %v701_v51  ;;  %v795_v20 = vor.u32 4788187, %v794_v50  ;;  %v879_v49 = vadd.s32 %v878_v23, %v874_v35  ;;  %v943_v54 = vshrl.u32 %v3595_v2, %v937_v3 }
  0xe7   :  { %v945_v17 = vshll.u32 %v3595_v2, %v936_v34  ;;  %v946_v18 = vshrl.u32 %v3596_v27, %v937_v3  ;;  %vm954_vm12 = vcmp.lt.s32.totalorder %v3052_v8, 1  ;;  %vm957_vm13 = vcmp.lt.s32.totalorder %v3052_v8, 4 }
  0xe8   :  { %v798_v4 = vcvt.s32.f32 %v791_v58  ;;  %v880_v48 = vadd.s32 536870912, %v879_v49  ;;  %v938_v22 = vshrl.u32 %v3602_v24, %v937_v3  ;;  %v941_v0 = vor.u32 %v940_v44, %v939_v39 }
  0xe9   :  { %v944_v47 = vor.u32 %v943_v54, %v942_v46  ;;  %v948_v19 = vshll.u32 %v3596_v27, %v936_v34  ;;  %v949_v52 = vshrl.u32 %v3597_v62, %v937_v3  ;;  %v951_v36 = vshll.u32 %v3597_v62, %v936_v34 }
  0xea   :  { %vm604_vm14 = vcmp.lt.s32.totalorder %v3038_v53, 2  ;;  %v796_v51 = vand.u32 2147483647, %v795_v20  ;;  %v3074_v50 = vshrl.u32 %v880_v48, 30  ;;  %v947_v35 = vor.u32 %v946_v18, %v945_v17 }
  0xeb   :  { %v952_v13 = vshrl.u32 %v3598_v31, %v937_v3  ;;  %vm718_vm15 = vcmp.lt.s32.totalorder %v2603_v61, 0  ;;  %v950_v39 = vor.u32 %v949_v52, %v948_v19  ;;  %v1028_v44 = vand.u32 2139095040, %v2723_v29 }
  0xec   :  { %v882_v46 = vshll.u32 %v3074_v50, 30  ;;  %vm956_vm2 = vcmp.lt.s32.totalorder %v3052_v8, 3  ;;  %v959_v20 = vsel %vm957_vm13, %v947_v35, 2102212464  ;;  %vm955_vm3 = vcmp.lt.s32.totalorder %v3052_v8, 2 }
  0xed   :  { %v953_v34 = vor.u32 %v952_v13, %v951_v36  ;;  %v962_v3 = vsel %vm954_vm12, %v941_v0, %v944_v47  ;;  %v963_v54 = vsel %vm957_vm13, %v950_v39, 920167782  ;;  %v970_v17 = vshll.u32 %v930_v63, 8 }
  0xee   :  { %v3607_v18 = vand.u32 2147483647, %v2603_v61  ;;  %v799_v19 = vmul.f32 %v798_v4, %v796_v51  ;;  %v3096_v52 = vsub.s32 %v879_v49, %v882_v46  ;;  %v958_v36 = vsel %vm954_vm12, %v938_v22, %v941_v0  ;;  %v3102_v58 = vpop.eup %2296 }
  0xef   :  { %v966_v13 = vsel %vm954_vm12, %v944_v47, %v947_v35  ;;  %v960_v63 = vsel %vm956_vm2, %v944_v47, %v959_v20  ;;  %v967_v23 = vsel %vm957_vm13, %v953_v34, 1326507024  ;;  %v1029_v4 = vshrl.u32 %v1028_v44, 23 }
  0xf0   :  { %vm3092_vm4 = vcmp.le.f32.partialorder %v3607_v18, 0.7853982  ;;  %v964_v18 = vsel %vm956_vm2, %v947_v35, %v963_v54  ;;  %v3110_v49 = vpop.eup %2298  ;;  %vm602_vm5 = vweird.f32 %v2495_v16  ;;  %v3610_v22 = vxor.u32 2147483648, %v2997_v10 }
  0xf1   :  { %v885_v51 = vsub.s32 0, %v3096_v52  ;;  %v965_v47 = vsel %vm955_vm3, %v962_v3, %v964_v18  ;;  %v968_v35 = vsel %vm956_vm2, %v950_v39, %v967_v23  ;;  %v3611_v44 = vxor.u32 2147483648, %v3009_v11 }
  0xf2   :  { %v610_v0 = vsel %vm608_vm10, %v3610_v22, %v3009_v11  ;;  %vm707_vm6 = vcmp.lt.s32.totalorder %v3055_v56, 2  ;;  %v969_v34 = vsel %vm955_vm3, %v966_v13, %v968_v35  ;;  %v800_v22 = vxor.u32 2147483648, %v799_v19 }
  0xf3   :  { %v607_v46 = vsel %vm605_vm11, %v2997_v10, %v3611_v44  ;;  %v3131_v20 = vmul.u32.u64.low %v970_v17, %v965_v47  ;;  %v3132_v54 = vmul.u32.u64.high %v970_v17, %v965_v47, %v3131_v20  ;;  %v802_v3 = vsub.s32 4, %v2949_v43 }
  0xf4   :  { %v2167_v23 = vmin.u32 %v885_v51, %v3096_v52  ;;  %v961_v39 = vsel %vm955_vm3, %v958_v36, %v960_v63  ;;  %v3578_v18 = vxor.u32 2147483648, %v3102_v58  ;;  %v2174_v41 = vadd.s32 4294967169, %v1029_v4 }
  0xf5   :  { %v3140_v44 = vmul.u32.u64.low %v970_v17, %v969_v34  ;;  %v3141_v9 = vmul.u32.u64.high %v970_v17, %v969_v34, %v3140_v44  ;;  %vm708_vm7 = vcmp.eq.s32.totalorder %v3055_v56, 0  ;;  %v3579_v13 = vxor.u32 2147483648, %v3110_v49 }
  0xf6   :  { %vm711_vm8 = vcmp.eq.s32.totalorder %v3055_v56, 2  ;;  %vm821_vm9 = vcmp.lt.s32.totalorder %v2712_v15, 0  ;;  %v887_v47 = vclz %v2167_v23  ;;  %v611_v51 = vsel %vm604_vm14, %v607_v46, %v610_v0 }
  0xf7   :  { %v977_v8 = vmul.u32 %v970_v17, %v961_v39  ;;  %v980_v36 = vadd.s32 1, %v3132_v54  ;;  %v1035_v63 = vadd.s32 1, %v2174_v41  ;;  %v801_v35 = vsel %vm718_vm15, %v800_v22, %v799_v19 }
  0xf8   :  { %v803_v4 = vsel %vm718_vm15, %v802_v3, %v2949_v43  ;;  %v2168_v34 = vadd.s32 4294967294, %v887_v47  ;;  %v3580_v44 = vand.u32 2147483647, %v2723_v29  ;;  %v713_v23 = vsel %vm711_vm8, %v3578_v18, %v3110_v49 }
  0xf9   :  { %v3612_v53 = vand.u32 2147483647, %v2712_v15  ;;  %v875_v41 = vadd.s32 %v3018_v32, %v3015_v40  ;;  %vm979_vm11 = vc.u32 %v3141_v9, %v3131_v20  ;;  %vm1036_vm12 = vcmp.gt.s32.totalorder %v1035_v63, 0 }
  0xfa   :  { %v710_v43 = vsel %vm708_vm7, %v3102_v58, %v3579_v13  ;;  %vm2169_vm13 = vcmp.lt.s32.totalorder %v2168_v34, 0  ;;  %v981_v19 = vsel %vm979_vm11, %v980_v36, %v3132_v54  ;;  %v1037_v0 = vsel %vm1036_vm12, %v1035_v63, 0 }
  0xfb   :  { %vm3161_vm10 = vcmp.le.f32.partialorder %v3612_v53, 0.7853982  ;;  %v804_v46 = vsel %vm3092_vm4, %v2603_v61, %v801_v35  ;;  %v890_v22 = vsel %vm2169_vm13, 0, %v2168_v34  ;;  %v905_v40 = vsub.s32 4, %v3074_v50 }
  0xfc   :  { %v982_v32 = vadd.s32 %v981_v19, %v977_v8  ;;  %v3181_v3 = vsel %vm3092_vm4, 0, %v803_v4  ;;  %v891_v39 = vsub.s32 32, %v890_v22  ;;  %v892_v47 = vshll.u32 %v3096_v52, %v890_v22 }
  0xfd   :  { %v895_v53 = vsub.s32 4294967266, %v890_v22  ;;  %v3186_v54 = vsel %vm602_vm5, nan, %v611_v51  ;;  %v3189_v36 = vand.u32 3, %v3181_v3  ;;  %v1039_v35 = vand.u32 31, %v1037_v0 }
  0xfe   :  { %v983_v63 = vadd.s32 536870912, %v982_v32  ;;  %v3193_v8 = vsel %vm707_vm6, %v710_v43, %v713_v23  ;;  %2300 = vcosq.f32 %v804_v46  ;;  %v893_v48 = vshrl.u32 %v875_v41, %v891_v39 }
  0xff   :  { %v896_v4 = vadd.s32 127, %v895_v53  ;;  %2302 = vsinq.f32 %v804_v46  ;;  %v906_v52 = vsel %vm821_vm9, %v905_v40, %v3074_v50  ;;  %v1040_v51 = vsub.s32 32, %v1039_v35 }
 0x100   :  { %v3198_v34 = vshrl.u32 %v983_v63, 30  ;;  %v894_v19 = vor.u32 %v893_v48, %v892_v47  ;;  %v1032_v18 = vand.u32 8388607, %v3580_v44  ;;  %v3202_v13 = vshrl.u32 %v1037_v0, 5 }
 0x101   :  { %v897_v22 = vshll.u32 %v896_v4, 23  ;;  %v1042_v23 = vshll.u32 %v3602_v24, %v1039_v35  ;;  %v1043_v41 = vshrl.u32 %v3594_v42, %v1040_v51  ;;  %v1045_v43 = vshll.u32 %v3594_v42, %v1039_v35 }
 0x102   :  { %v985_v56 = vshll.u32 %v3198_v34, 30  ;;  %v901_v50 = vcvt.s32.f32 %v894_v19  ;;  %v3210_v40 = vsel %vm3161_vm10, 0, %v906_v52  ;;  %v1046_v39 = vshrl.u32 %v3595_v2, %v1040_v51 }
 0x103   :  { %v898_v46 = vor.u32 4788187, %v897_v22  ;;  %v3214_v47 = vand.u32 3, %v3210_v40  ;;  %v1048_v53 = vshll.u32 %v3595_v2, %v1039_v35  ;;  %v1049_v63 = vshrl.u32 %v3596_v27, %v1040_v51 }
 0x104   :  { %v3216_v0 = vsub.s32 %v982_v32, %v985_v56  ;;  %v1033_v4 = vor.u32 8388608, %v1032_v18  ;;  %v1051_v42 = vshll.u32 %v3596_v27, %v1039_v35  ;;  %vm1057_vm14 = vcmp.lt.s32.totalorder %v3202_v13, 1 }
 0x105   :  { %v899_v48 = vand.u32 2147483647, %v898_v46  ;;  %v1044_v19 = vor.u32 %v1043_v41, %v1042_v23  ;;  %v1047_v22 = vor.u32 %v1046_v39, %v1045_v43  ;;  %v1052_v44 = vshrl.u32 %v3597_v62, %v1040_v51 }
 0x106   :  { %v988_v52 = vsub.s32 0, %v3216_v0  ;;  %vm705_vm15 = vweird.f32 %v2594_v5  ;;  %v1041_v56 = vshrl.u32 %v3602_v24, %v1040_v51  ;;  %v1054_v2 = vshll.u32 %v3597_v62, %v1039_v35 }
 0x107   :  { %v902_v32 = vmul.f32 %v901_v50, %v899_v48  ;;  %v1055_v46 = vshrl.u32 %v3598_v31, %v1040_v51  ;;  %v1050_v27 = vor.u32 %v1049_v63, %v1048_v53  ;;  %vm1059_vm2 = vcmp.lt.s32.totalorder %v3202_v13, 3 }
 0x108   :  { %v2171_v18 = vmin.u32 %v988_v52, %v3216_v0  ;;  %v1229_v16 = vadd.s32 3, %v2805_v59  ;;  %v3231_v23 = vpop.eup %2300  ;;  %v1053_v43 = vor.u32 %v1052_v44, %v1051_v42  ;;  %vm1060_vm3 = vcmp.lt.s32.totalorder %v3202_v13, 4 }
 0x109   :  { %v903_v41 = vxor.u32 2147483648, %v902_v32  ;;  %v1056_v39 = vor.u32 %v1055_v46, %v1054_v2  ;;  %v3234_v50 = vpop.eup %2302  ;;  %vm1058_vm4 = vcmp.lt.s32.totalorder %v3202_v13, 2  ;;  %v1062_v62 = vsel %vm1060_vm3, %v1050_v27, 2102212464 }
 0x10a   :  { %v990_v24 = vclz %v2171_v18  ;;  %v1065_v31 = vsel %vm1057_vm14, %v1044_v19, %v1047_v22  ;;  %vm811_vm6 = vcmp.eq.s32.totalorder %v3189_v36, 0  ;;  %v1061_v44 = vsel %vm1057_vm14, %v1041_v56, %v1044_v19 }
 0x10b   :  { %v904_v59 = vsel %vm821_vm9, %v903_v41, %v902_v32  ;;  %v1066_v35 = vsel %vm1060_vm3, %v1053_v43, 920167782  ;;  %v1073_v51 = vshll.u32 %v1033_v4, 8  ;;  %v1069_v42 = vsel %vm1057_vm14, %v1047_v22, %v1050_v27 }
 0x10c   :  { %v907_v53 = vsel %vm3161_vm10, %v2712_v15, %v904_v59  ;;  %v2172_v63 = vadd.s32 4294967294, %v990_v24  ;;  %v1067_v48 = vsel %vm1059_vm2, %v1050_v27, %v1066_v35  ;;  %v1063_v52 = vsel %vm1059_vm2, %v1047_v22, %v1062_v62 }
 0x10d   :  { %2304 = vcosq.f32 %v907_v53  ;;  %v1068_v19 = vsel %vm1058_vm4, %v1065_v31, %v1067_v48  ;;  %v1070_v4 = vsel %vm1060_vm3, %v1056_v39, 1326507024  ;;  %vm810_vm7 = vcmp.lt.s32.totalorder %v3189_v36, 2 }
 0x10e   :  { %2306 = vsinq.f32 %v907_v53  ;;  %v978_v17 = vadd.s32 %v3131_v20, %v3141_v9  ;;  %vm2173_vm8 = vcmp.lt.s32.totalorder %v2172_v63, 0  ;;  %v1071_v32 = vsel %vm1059_vm2, %v1053_v43, %v1070_v4 }
 0x10f   :  { %v993_v56 = vsel %vm2173_vm8, 0, %v2172_v63  ;;  %v1072_v22 = vsel %vm1058_vm4, %v1069_v42, %v1071_v32  ;;  %v3268_v2 = vmul.u32.u64.low %v1073_v51, %v1068_v19  ;;  %v3269_v46 = vmul.u32.u64.high %v1073_v51, %v1068_v19, %v3268_v2 }
 0x110   :  { %vm924_vm9 = vcmp.lt.s32.totalorder %v2715_v14, 0  ;;  %v994_v18 = vsub.s32 32, %v993_v56  ;;  %v995_v27 = vshll.u32 %v3216_v0, %v993_v56  ;;  %v998_v41 = vsub.s32 4294967266, %v993_v56 }
 0x111   :  { %v1064_v9 = vsel %vm1058_vm4, %v1061_v44, %v1063_v52  ;;  %vm814_vm10 = vcmp.eq.s32.totalorder %v3189_v36, 2  ;;  %v815_v20 = vxor.u32 2147483648, %v3231_v23  ;;  %v715_v24 = vsel %vm705_vm15, nan, %v3193_v8 }
 0x112   :  { %v3278_v43 = vmul.u32.u64.low %v1073_v51, %v1072_v22  ;;  %v3279_v39 = vmul.u32.u64.high %v1073_v51, %v1072_v22, %v3278_v43  ;;  %vm808_vm11 = vweird.f32 %v2603_v61  ;;  %v812_v62 = vxor.u32 2147483648, %v3234_v50  ;;  %v3631_v61 = vld [vmem:[#allocation12_spill] sm:$0xff] }
 0x113   :  { %v996_v0 = vshrl.u32 %v978_v17, %v994_v18  ;;  %v999_v31 = vadd.s32 127, %v998_v41  ;;  %v1080_v59 = vmul.u32 %v1073_v51, %v1064_v9  ;;  %v1083_v13 = vadd.s32 1, %v3269_v46 }
 0x114   :  { %v1230_v44 = vand.u32 3, %v1229_v16  ;;  %v1333_v35 = vadd.s32 3, %v2847_v60  ;;  %vm914_vm12 = vcmp.eq.s32.totalorder %v3214_v47, 0  ;;  %vm917_vm13 = vcmp.eq.s32.totalorder %v3214_v47, 2 }
 0x115   :  { %v3615_v53 = vand.u32 2147483647, %v2715_v14  ;;  %v997_v63 = vor.u32 %v996_v0, %v995_v27  ;;  %v1000_v48 = vshll.u32 %v999_v31, 23  ;;  %v3298_v51 = vmul.f32 %v3030_v33, %v2787_v7 }
 0x116   :  { %v816_v16 = vsel %vm814_vm10, %v815_v20, %v3234_v50  ;;  %v1008_v60 = vsub.s32 4, %v3198_v34  ;;  %vm1082_vm2 = vc.u32 %v3279_v39, %v3268_v2  ;;  %v3310_v42 = vmul.f32 %v3035_v1, %v2797_v6 }
 0x117   :  { %vm3292_vm14 = vcmp.le.f32.partialorder %v3615_v53, 0.7853982  ;;  %v813_v33 = vsel %vm811_vm6, %v3231_v23, %v812_v62  ;;  %v1001_v52 = vor.u32 4788187, %v1000_v48  ;;  %v1004_v19 = vcvt.s32.f32 %v997_v63  ;;  %v3318_v17 = vpop.eup %2304 }
 0x118   :  { %v1084_v4 = vsel %vm1082_vm2, %v1083_v13, %v3269_v46  ;;  %vm913_vm3 = vcmp.lt.s32.totalorder %v3214_v47, 2  ;;  %vm1232_vm4 = vcmp.eq.s32.totalorder %v1230_v44, 0  ;;  %vm1235_vm8 = vcmp.eq.s32.totalorder %v1230_v44, 2  ;;  %v3321_v1 = vpop.eup %2306 }
 0x119   :  { %v1085_v32 = vadd.s32 %v1084_v4, %v1080_v59  ;;  %v1334_v56 = vand.u32 3, %v1333_v35  ;;  %v1002_v22 = vand.u32 2147483647, %v1001_v52  ;;  %v3325_v18 = vmul.f32 %v3186_v54, %v2801_v30 }
 0x11a   :  { %v3328_v27 = vmul.f32 %v715_v24, %v2855_v57  ;;  %v1437_v46 = vadd.s32 3, %v2946_v55  ;;  %v817_v41 = vsel %vm810_vm7, %v813_v33, %v816_v16  ;;  %v1009_v9 = vsel %vm924_vm9, %v1008_v60, %v3198_v34 }
 0x11b   :  { %v1086_v43 = vadd.s32 536870912, %v1085_v32  ;;  %vm1231_vm6 = vcmp.lt.s32.totalorder %v1230_v44, 2  ;;  %vm911_vm10 = vweird.f32 %v2712_v15  ;;  %v1005_v0 = vmul.f32 %v1004_v19, %v1002_v22 }
 0x11c   :  { %v3618_v54 = vxor.u32 2147483648, %v2851_v37  ;;  %v3619_v24 = vxor.u32 2147483648, %v2839_v12  ;;  %v1541_v36 = vadd.s32 3, %v3047_v25  ;;  %v915_v59 = vxor.u32 2147483648, %v3321_v1 }
 0x11d   :  { %v918_v13 = vxor.u32 2147483648, %v3318_v17  ;;  %v1087_v34 = vshrl.u32 %v1086_v43, 30  ;;  %vm1336_vm7 = vcmp.eq.s32.totalorder %v1334_v56, 0  ;;  %v1006_v35 = vxor.u32 2147483648, %v1005_v0 }
 0x11e   :  { %v1234_v31 = vsel %vm1232_vm4, %v2839_v12, %v3618_v54  ;;  %v1237_v55 = vsel %vm1235_vm8, %v3619_v24, %v2851_v37  ;;  %vm1339_vm2 = vcmp.eq.s32.totalorder %v1334_v56, 2  ;;  %v1438_v53 = vand.u32 3, %v1437_v46 }
 0x11f   :  { %v1645_v63 = vadd.s32 3, %v3181_v3  ;;  %v3349_v48 = vsel %vm808_vm11, nan, %v817_v41  ;;  %v1011_v12 = vsel %vm3292_vm14, 0, %v1009_v9  ;;  %vm1027_vm4 = vcmp.lt.s32.totalorder %v2723_v29, 0 }
 0x120   :  { %v1088_v37 = vshll.u32 %v1087_v34, 30  ;;  %v1238_v25 = vsel %vm1231_vm6, %v1234_v31, %v1237_v55  ;;  %v1007_v16 = vsel %vm924_vm9, %v1006_v35, %v1005_v0  ;;  %vm1335_vm8 = vcmp.lt.s32.totalorder %v1334_v56, 2 }
 0x121   :  { %v3620_v60 = vxor.u32 2147483648, %v2891_v21  ;;  %v1542_v33 = vand.u32 3, %v1541_v36  ;;  %v916_v52 = vsel %vm914_vm12, %v3318_v17, %v915_v59  ;;  %v919_v44 = vsel %vm917_vm13, %v918_v13, %v3321_v1 }
 0x122   :  { %v3370_v19 = vsub.s32 %v1085_v32, %v1088_v37  ;;  %v3621_v4 = vxor.u32 2147483648, %v2885_v28  ;;  %v3375_v46 = vand.u32 3, %v1011_v12  ;;  %v3622_v41 = vand.u32 2147483647, %v2723_v29 }
 0x123   :  { %v1338_v3 = vsel %vm1336_vm7, %v2885_v28, %v3620_v60  ;;  %v1239_v43 = vsel %vm396_vm0, nan, %v1238_v25  ;;  %vm1440_vm12 = vcmp.eq.s32.totalorder %v1438_v53, 0  ;;  %v1646_v0 = vand.u32 3, %v1645_v63 }
 0x124   :  { %v1341_v22 = vsel %vm1339_vm2, %v3621_v4, %v2891_v21  ;;  %vm3379_vm9 = vcmp.le.f32.partialorder %v3622_v41, 0.7853982  ;;  %v1010_v32 = vsel %vm3292_vm14, %v2715_v14, %v1007_v16  ;;  %v1081_v28 = vadd.s32 %v3268_v2, %v3279_v39  ;;  %v3632_v4 = vld [vmem:[#allocation11_spill] sm:$0xff] }
 0x125   :  { %v1091_v21 = vsub.s32 0, %v3370_v19  ;;  %vm1443_vm13 = vcmp.eq.s32.totalorder %v1438_v53, 2  ;;  %v920_v54 = vsel %vm913_vm3, %v916_v52, %v919_v44  ;;  %v1111_v31 = vsub.s32 4, %v1087_v34 }
 0x126   :  { %v1342_v24 = vsel %vm1335_vm8, %v1338_v3, %v1341_v22  ;;  %vm1439_vm6 = vcmp.lt.s32.totalorder %v1438_v53, 2  ;;  %v3625_v55 = vxor.u32 2147483648, %v3009_v11  ;;  %vm1544_vm0 = vcmp.eq.s32.totalorder %v1542_v33, 0 }
 0x127   :  { %v2175_v38 = vmin.u32 %v1091_v21, %v3370_v19  ;;  %vm1547_vm14 = vcmp.eq.s32.totalorder %v1542_v33, 2  ;;  %2308 = vcosq.f32 %v1010_v32  ;;  %v3626_v2 = vxor.u32 2147483648, %v2997_v10 }
 0x128   :  { %v1442_v8 = vsel %vm1440_vm12, %v2997_v10, %v3625_v55  ;;  %vm1648_vm7 = vcmp.eq.s32.totalorder %v1646_v0, 0  ;;  %v1749_v47 = vadd.s32 3, %v3210_v40  ;;  %v921_v56 = vsel %vm911_vm10, nan, %v920_v54 }
 0x129   :  { %v1445_v39 = vsel %vm1443_vm13, %v3626_v2, %v3009_v11  ;;  %v1093_v36 = vclz %v2175_v38  ;;  %vm1543_vm3 = vcmp.lt.s32.totalorder %v1542_v33, 2  ;;  %vm1651_vm2 = vcmp.eq.s32.totalorder %v1646_v0, 2 }
 0x12a   :  { %v1112_v35 = vsel %vm1027_vm4, %v1111_v31, %v1087_v34  ;;  %v3627_v63 = vxor.u32 2147483648, %v3110_v49  ;;  %v3628_v10 = vxor.u32 2147483648, %v3102_v58  ;;  %v1750_v25 = vand.u32 3, %v1749_v47 }
 0x12b   :  { %2310 = vsinq.f32 %v1010_v32  ;;  %v2176_v40 = vadd.s32 4294967294, %v1093_v36  ;;  %vm1647_vm8 = vcmp.lt.s32.totalorder %v1646_v0, 2  ;;  %v1650_v16 = vsel %vm1648_vm7, %v3231_v23, %v812_v62  ;;  %v3630_v0 = vld [vmem:[#allocation18_spill] sm:$0xff] }
 0x12c   :  { %v1546_v37 = vsel %vm1544_vm0, %v3102_v58, %v3627_v63  ;;  %v1549_v11 = vsel %vm1547_vm14, %v3628_v10, %v3110_v49  ;;  %v1653_v34 = vsel %vm1651_vm2, %v815_v20, %v3234_v50  ;;  %vm1752_vm12 = vcmp.eq.s32.totalorder %v1750_v25, 0 }
 0x12d   :  { %vm1755_vm13 = vcmp.eq.s32.totalorder %v1750_v25, 2  ;;  %v1853_v60 = vadd.s32 3, %v1011_v12  ;;  %vm2177_vm0 = vcmp.lt.s32.totalorder %v2176_v40, 0  ;;  %v3420_v58 = vsel %vm3379_vm9, 0, %v1112_v35 }
 0x12e   :  { %v1446_v49 = vsel %vm1439_vm6, %v1442_v8, %v1445_v39  ;;  %v1550_v3 = vsel %vm1543_vm3, %v1546_v37, %v1549_v11  ;;  %v1096_v52 = vsel %vm2177_vm0, 0, %v2176_v40  ;;  %vm1751_vm14 = vcmp.lt.s32.totalorder %v1750_v25, 2 }
 0x12f   :  { %v1754_v62 = vsel %vm1752_vm12, %v3318_v17, %v915_v59  ;;  %v1757_v23 = vsel %vm1755_vm13, %v918_v13, %v3321_v1  ;;  %v1097_v50 = vsub.s32 32, %v1096_v52  ;;  %v1098_v20 = vshll.u32 %v3370_v19, %v1096_v52 }
 0x130   :  { %v1101_v12 = vsub.s32 4294967266, %v1096_v52  ;;  %v1654_v44 = vsel %vm1647_vm8, %v1650_v16, %v1653_v34  ;;  %v1132_v53 = vmul.f32 %v3349_v48, %v2940_v26  ;;  %v1343_v33 = vsel %vm499_vm1, nan, %v1342_v24 }
 0x131   :  { %v1447_v22 = vsel %vm602_vm5, nan, %v1446_v49  ;;  %v3438_v59 = vand.u32 3, %v1853_v60  ;;  %v1099_v41 = vshrl.u32 %v1081_v28, %v1097_v50  ;;  %v1551_v1 = vsel %vm705_vm15, nan, %v1550_v3  ;;  %v3442_v19 = vpop.eup %2308 }
 0x132   :  { %v1102_v17 = vadd.s32 127, %v1101_v12  ;;  %v1758_v13 = vsel %vm1751_vm14, %v1754_v62, %v1757_v23  ;;  %vm1020_vm6 = vcmp.eq.s32.totalorder %v3375_v46, 2  ;;  %v1133_v48 = vmul.f32 %v921_v56, %v3630_v0 }
 0x133   :  { %v1655_v45 = vsel %vm808_vm11, nan, %v1654_v44  ;;  %v3449_v32 = vadd.s32 3, %v3420_v58  ;;  %v1968_v21 = vmul.f32 %v1239_v43, %v2787_v7  ;;  %v1100_v28 = vor.u32 %v1099_v41, %v1098_v20 }
 0x134   :  { %v1103_v54 = vshll.u32 %v1102_v17, 23  ;;  %v1969_v5 = vmul.f32 %v1343_v33, %v2797_v6  ;;  %v1970_v31 = vmul.f32 %v1447_v22, %v2801_v30  ;;  %v1759_v24 = vsel %vm911_vm10, nan, %v1758_v13 }
 0x135   :  { %vm1859_vm1 = vcmp.eq.s32.totalorder %v3438_v59, 2  ;;  %v1971_v38 = vmul.f32 %v1551_v1, %v2855_v57  ;;  %v1978_v55 = vmul.f32 %v3298_v51, %v3631_v61  ;;  %v2311_v8 = vpop.eup %2310  ;;  %vm1017_vm5 = vcmp.eq.s32.totalorder %v3375_v46, 0 }
 0x136   :  { %v1021_v7 = vxor.u32 2147483648, %v3442_v19  ;;  %v1104_v43 = vor.u32 4788187, %v1103_v54  ;;  %v1107_v2 = vcvt.s32.f32 %v1100_v28  ;;  %v1972_v6 = vmul.f32 %v1655_v45, %v2940_v26 }
 0x137   :  { %vm1856_vm15 = vcmp.eq.s32.totalorder %v3438_v59, 0  ;;  %v1979_v15 = vmul.f32 %v3310_v42, %v3631_v61  ;;  %v1980_v30 = vmul.f32 %v3325_v18, %v3631_v61  ;;  %v1981_v57 = vmul.f32 %v3328_v27, %v3631_v61 }
 0x138   :  { %v1982_v51 = vmul.f32 %v1132_v53, %v3631_v61  ;;  %v1105_v39 = vand.u32 2147483647, %v1104_v43  ;;  %v1973_v47 = vmul.f32 %v1759_v24, %v3630_v0  ;;  %v1983_v56 = vmul.f32 %v1133_v48, %v3631_v61 }
 0x139   :  { %v1986_v36 = vadd.f32 1.0, %v1978_v55  ;;  %v1987_v26 = vadd.f32 1.0, %v1979_v15  ;;  %v1988_v35 = vadd.f32 1.0, %v1980_v30  ;;  %v1989_v63 = vadd.f32 1.0, %v1981_v57 }
 0x13a   :  { %v3473_v37 = vadd.f32 1.0, %v1982_v51  ;;  %vm1016_vm11 = vcmp.lt.s32.totalorder %v3375_v46, 2  ;;  %v1018_v42 = vxor.u32 2147483648, %v2311_v8  ;;  %v1108_v18 = vmul.f32 %v1107_v2, %v1105_v39  ;;  %v3633_v2 = vld [vmem:[#allocation14_spill] sm:$0xff] }
 0x13b   :  { %vm1855_vm10 = vcmp.lt.s32.totalorder %v3438_v59, 2  ;;  %v3477_v27 = vadd.f32 1.0, %v1983_v56  ;;  %v2002_v10 = vcombine.low %v1986_v36, %v1987_v26  ;;  %v2003_v11 = vcombine.low %v1988_v35, %v1989_v63 }
 0x13c   :  { %v2384_v25 = vmov 1966171168   ;;  %v2054_v16 = vmul.f32 %v1968_v21, %v3631_v61  ;;  %v1109_v34 = vxor.u32 2147483648, %v1108_v18  ;;  %v2055_v49 = vmul.f32 %v1969_v5, %v3631_v61 }
 0x13d   :  { %v2007_v40 = vunpack.c.l.s4 %v2384_v25  ;;  %v2004_v60 = vcombine.low %v3473_v37, %v3477_v27  ;;  %v2056_v3 = vmul.f32 %v1970_v31, %v3631_v61  ;;  %v2057_v62 = vmul.f32 %v1971_v38, %v3631_v61  ;;  %v1977_v37 = vld [vmem:[#allocation4 + $0x8] sm:$0xff] }
 0x13e   :  { %v2058_v23 = vmul.f32 %v1972_v6, %v3631_v61  ;;  %v2059_v50 = vmul.f32 %v1973_v47, %v3631_v61  ;;  %v1022_v20 = vsel %vm1020_vm6, %v1021_v7, %v2311_v8  ;;  %v1110_v12 = vsel %vm1027_vm4, %v1109_v34, %v1108_v18  ;;  %v3634_v6 = vld [vmem:[#allocation16_spill] sm:$0xff] }
 0x13f   :  { %v2008_v52 = vunpack.c.0.s8 %v2007_v40  ;;  %v2062_v44 = vadd.f32 1.0, %v2054_v16  ;;  %v2063_v53 = vadd.f32 1.0, %v2055_v49  ;;  %v1113_v33 = vsel %vm3379_vm9, %v2723_v29, %v1110_v12 }
 0x140   :  { %v2064_v41 = vadd.f32 1.0, %v2056_v3  ;;  %v2065_v17 = vadd.f32 1.0, %v2057_v62  ;;  %2312 = vcosq.f32 %v1113_v33  ;;  %v1861_v1 = vsel %vm1859_vm1, %v1021_v7, %v2311_v8 }
 0x141   :  { %v3495_v22 = vsub.s32 %v2008_v52, %v3632_v4  ;;  %v2066_v13 = vadd.f32 1.0, %v2058_v23  ;;  %v2067_v0 = vadd.f32 1.0, %v2059_v50  ;;  %v1019_v48 = vsel %vm1017_vm5, %v3442_v19, %v1018_v42 }
 0x142   :  { %2314 = vsinq.f32 %v1113_v33  ;;  %v1858_v21 = vsel %vm1856_vm15, %v3442_v19, %v1018_v42  ;;  %v2078_v28 = vcombine.low %v2062_v44, %v2063_v53  ;;  %v2079_v54 = vcombine.low %v2064_v41, %v2065_v17 }
 0x143   :  { %v2012_v45 = vrot.slane %v2002_v10, %v3495_v22  ;;  %v2019_v9 = vrot.slane %v2003_v11, %v3495_v22  ;;  %v2080_v5 = vcombine.low %v2066_v13, %v2067_v0  ;;  %vm1014_vm4 = vweird.f32 %v2715_v14  ;;  %v1976_v0 = vld [vmem:[#allocation4] sm:$0xff] }
 0x144   :  { %v2088_v24 = vrot.slane %v2078_v28, %v3495_v22  ;;  %v2095_v38 = vrot.slane %v2079_v54, %v3495_v22  ;;  %v1023_v55 = vsel %vm1016_vm11, %v1019_v48, %v1022_v20  ;;  %v1862_v8 = vsel %vm1855_vm10, %v1858_v21, %v1861_v1 }
 0x145   :  { %v2034_v31 = vcombine.low %v2012_v45, %v2019_v9  ;;  %v1118_v7 = vand.u32 3, %v3420_v58  ;;  %v1958_v19 = vand.u32 3, %v3449_v32  ;;  %v294_v15 = vmul.f32 %v3634_v6, %v3633_v2  ;;  %v3635_v58 = vld [vmem:[#allocation15_spill] sm:$0xff]  ;;  %v3636_v32 = vld [vmem:[#allocation17_spill] sm:$0xff] }
 0x146   :  { %v2110_v43 = vcombine.low %v2088_v24, %v2095_v38  ;;  %v1024_v30 = vsel %vm1014_vm4, nan, %v1023_v55  ;;  %v1863_v57 = vsel %vm1014_vm4, nan, %v1862_v8  ;;  %v295_v56 = vmul.f32 %v3636_v32, %v3635_v58 }
 0x147   :  { %vm1120_vm9 = vcmp.eq.s32.totalorder %v1118_v7, 0  ;;  %vm1123_vm7 = vcmp.eq.s32.totalorder %v1118_v7, 2  ;;  %vm1963_vm3 = vcmp.eq.s32.totalorder %v1958_v19, 2  ;;  %v1134_v39 = vmul.f32 %v1024_v30, %v294_v15 }
 0x148   :  { %vm1960_vm2 = vcmp.eq.s32.totalorder %v1958_v19, 0  ;;  %v1974_v59 = vmul.f32 %v1863_v57, %v294_v15  ;;  %vm1119_vm8 = vcmp.lt.s32.totalorder %v1118_v7, 2  ;;  %vm1959_vm12 = vcmp.lt.s32.totalorder %v1958_v19, 2 }
 0x149   :  { %vm1117_vm13 = vweird.f32 %v2723_v29  ;;  %v1984_v10 = vmul.f32 %v1134_v39, %v3631_v61  ;;  %v2026_v20 = vrot.slane %v2004_v60, %v3495_v22  ;;  %v2102_v44 = vrot.slane %v2080_v5, %v3495_v22 }
 0x14a   :  { %v2313_v51 = vpop.eup %2312  ;;  %v2060_v11 = vmul.f32 %v1974_v59, %v3631_v61  ;;  %v2042_v41 = vrot.slane %v2034_v31, %v3495_v22  ;;  %v2118_v17 = vrot.slane %v2110_v43, %v3495_v22 }
 0x14b   :  { %v1124_v46 = vxor.u32 2147483648, %v2313_v51  ;;  %v1992_v3 = vadd.f32 1.0, %v1984_v10 }
 0x14c   :  { %v2315_v14 = vpop.eup %2314  ;;  %v2068_v29 = vadd.f32 1.0, %v2060_v11 }
 0x14d   :  { %v1121_v47 = vxor.u32 2147483648, %v2315_v14  ;;  %v1125_v36 = vsel %vm1123_vm7, %v1124_v46, %v2315_v14  ;;  %v1965_v26 = vsel %vm1963_vm3, %v1124_v46, %v2315_v14 }
 0x14f   :  { %v1122_v35 = vsel %vm1120_vm9, %v2313_v51, %v1121_v47  ;;  %v1962_v63 = vsel %vm1960_vm2, %v2313_v51, %v1121_v47 }
 0x150   :  { %v1126_v42 = vsel %vm1119_vm8, %v1122_v35, %v1125_v36  ;;  %v1966_v18 = vsel %vm1959_vm12, %v1962_v63, %v1965_v26 }
 0x151   :  { %v1127_v25 = vsel %vm1117_vm13, nan, %v1126_v42  ;;  %v1967_v40 = vsel %vm1117_vm13, nan, %v1966_v18 }
 0x152   :  { %v1135_v16 = vmul.f32 %v1127_v25, %v295_v56  ;;  %v1975_v34 = vmul.f32 %v1967_v40, %v295_v56 }
 0x154   :  { %v1985_v49 = vmul.f32 %v1135_v16, %v3631_v61  ;;  %v2061_v52 = vmul.f32 %v1975_v34, %v3631_v61 }
 0x156   :  { %v1993_v62 = vadd.f32 1.0, %v1985_v49  ;;  %v2069_v23 = vadd.f32 1.0, %v2061_v52 }
 0x158   :  { %v2005_v50 = vcombine.low %v1992_v3, %v1993_v62  ;;  %v2081_v12 = vcombine.low %v2068_v29, %v2069_v23 }
 0x15a   :  { %v2033_v53 = vrot.slane %v2005_v50, %v3495_v22  ;;  %v2109_v33 = vrot.slane %v2081_v12, %v3495_v22 }
 0x15c   :  { %v2035_v4 = vcombine.low %v2026_v20, %v2033_v53  ;;  %v2111_v61 = vcombine.low %v2102_v44, %v2109_v33 }
 0x15e   :  { %v2049_v1 = vrot.slane %v2035_v4, %v3495_v22  ;;  %v2125_v13 = vrot.slane %v2111_v61, %v3495_v22 }
 0x160   :  { %v2050_v27 = vcombine.low %v2042_v41, %v2049_v1  ;;  %v2126_v60 = vcombine.low %v2118_v17, %v2125_v13 }
 0x162   :  { %v2052_v48 = vmul.f32 %v2050_v27, %v1976_v0  ;;  %v2128_v45 = vmul.f32 %v2126_v60, %v1977_v37 }
 0x164   :  { %2053 = vst [vmem:[#allocation7] sm:$0xff] %v2052_v48  ;;  %2129 = vst [vmem:[#allocation7 + $0x8] sm:$0xff] %v2128_v45 }
 0x165   :  { %2359 = shalt.err (!%p2356_p1)
}
 0x166   :  { %s2360_s10 = scalar_lea.hbm %s3550_s2, 256 }
 0x167   :  { %p2361_p2 = scmp.ne.s32.totalorder %s3550_s2, %s2360_s10  ;;  %p2364_p3 = scmp.lt.u32.totalorder %s2360_s10, %s3550_s2 }
 0x169   :  { %p2366_p4 = pnand %p2364_p3, %p2361_p2 }
 0x16b   :  { %2369 = shalt.err (!%p2366_p4)
}
 0x16c   :  { %2139 = dma.vmem_to_hbm [thread:$0]  %s2137_s6, 256, %s3550_s2, [#allocation6]  }
 0x16d   :  { %2374 = dma.done.wait [#allocation6], 256  }
 0x16e   :  { %2375 = vsyncadd [#allocation6], 4294967040 }
 0x16f   :  { %2143 = vsyncpa [#allocation5], 1 }
 0x170   :  { %2144 = vsyncpa [#allocation6], 1 }

</bundles_post_ra>
